<compile_context>
chip_gen: v5e
topology: v5e:2x2
jax: 0.10.0
libtpu: 0.0.40
codegen_flags: <defaults>
</compile_context>

<pallas_src>
import functools
import math

import jax
import jax.numpy as jnp
from jax.experimental import pallas as pl
from jax.experimental.pallas import tpu as pltpu


def _mha_kernel(x_ref, qkv_w_ref, qkv_b_ref, out_w_ref, out_b_ref, o_ref, *,
                num_heads, compute_dtype, approx_recip):
    """MHA forward for one batch block (mask=None path)."""
    b_blk, S, D = x_ref.shape
    hd = D // num_heads
    rows = b_blk * S

    # QKV projection: all batch*seq rows of the block in one MXU pass.
    # The 1/sqrt(hd) attention scale is folded into the Q weights wrapper-side.
    x2d = x_ref[...].reshape(rows, D).astype(compute_dtype)
    qkv = jnp.dot(x2d, qkv_w_ref[...], preferred_element_type=jnp.float32)
    qkv = qkv + qkv_b_ref[...]                                  # (rows, 3D), f32
    qkv3 = qkv.reshape(b_blk, S, 3 * D)

    # Out-projection accumulator; written to o_ref exactly once at the end.
    acc = jnp.zeros((rows, D), jnp.float32)

    # Static Python loop over heads: hd is generally not a multiple of 128, so
    # the lane slices below need static offsets (dynamic non-aligned lane ds
    # would force XLU relayouts or fail to lower).  H is small, and only `acc`
    # is carried across iterations, so live ranges stay bounded per head.
    # TODO(synk): batch heads into one multi-batch-dim dot_general (or pad
    #             head_dim to 128 lanes wrapper-side) to overlap head k+1's
    #             score matmul with head k's exp (the binding EUP slot).
    # TODO(synk): for S >= ~512 add a KV-tile grid axis ("arbitrary") with
    #             online-softmax m/l/acc scratch so the (S, S) scores are never
    #             fully materialized (important under v7x's 64 MiB VMEM).
    for h in range(num_heads):
        lo = h * hd
        q_h = qkv3[:, :, lo:lo + hd].astype(compute_dtype)               # (b,S,hd)
        k_h = qkv3[:, :, D + lo:D + lo + hd].astype(compute_dtype)       # (b,S,hd)
        v_h = qkv3[:, :, 2 * D + lo:2 * D + lo + hd].astype(compute_dtype)

        # scores = q @ k^T via contraction on head_dim (no explicit transpose;
        # the MXU consumes the "transposed" operand natively).
        s = jax.lax.dot_general(q_h, k_h, (((2,), (2,)), ((0,), (0,))),
                                preferred_element_type=jnp.float32)      # (b,S,S)

        # Softmax statistics in f32; normalization deferred past P@V so the
        # reciprocal/multiply touches (S, hd) values instead of (S, S).
        s = s - jnp.max(s, axis=-1, keepdims=True)
        p = jnp.exp(s)
        denom = jnp.sum(p, axis=-1, keepdims=True)                       # (b,S,1)

        ctx = jax.lax.dot_general(p.astype(compute_dtype), v_h,
                                  (((2,), (1,)), ((0,), (0,))),
                                  preferred_element_type=jnp.float32)    # (b,S,hd)
        ctx = ctx * pl.reciprocal(denom, approx=approx_recip)            # exact by default

        # This head's slice of the out-projection, accumulated in f32.
        # out_w rows [lo, lo+hd) are a sublane-aligned static ref slice.
        acc = acc + jnp.dot(ctx.reshape(rows, hd).astype(compute_dtype),
                            out_w_ref[lo:lo + hd, :],
                            preferred_element_type=jnp.float32)

    out = acc + out_b_ref[...]
    o_ref[...] = out.reshape(b_blk, S, D).astype(o_ref.dtype)
    # TODO(synk): optional attention mask (forward's `mask` arg) not implemented;
    #             this module is exercised with mask=None.


def _working_set_bytes(batch_block, S, D, x_itemsize, cd_itemsize):
    """Per-grid-step VMEM activation working set (upper bound)."""
    f32 = 4
    rows = batch_block * S
    return (
        2 * rows * D * x_itemsize                        # x block (double-buffered)
        + 2 * rows * D * x_itemsize                      # o block (double-buffered)
        + rows * D * cd_itemsize                         # x2d compute-dtype copy
        + rows * 3 * D * f32                             # qkv projection result (f32)
        + rows * 3 * D * cd_itemsize                     # q/k/v compute-dtype copies
        + rows * D * f32                                 # out-projection accumulator
        + batch_block * S * S * (2 * f32 + cd_itemsize)  # one head's scores + probs + p cast
    )


def multi_head_attention(x, params, num_heads, *,
                         compute_dtype=jnp.float32,
                         batch_block=None,
                         single_buffer_weights=True,
                         approx_recip=False):
    """Apply MultiHeadAttention with a Pallas kernel, grid over batch blocks."""
    B, S, D = x.shape
    assert D % num_heads == 0, "d_model must be divisible by num_heads"
    hd = D // num_heads
    # Note: S % 8 != 0 would force sublane relayouts in the (b,S,D)<->(rows,D)
    # reshapes (correct but slow); pad seq wrapper-side for ragged lengths.

    # ---- wrapper-side (free) weight preprocessing ---------------------------
    scale = 1.0 / math.sqrt(hd)
    qkv_w = params["qkv_w"].at[:, :D].multiply(scale)     # fold scale into Q proj
    qkv_b = params["qkv_b"].at[:, :D].multiply(scale)
    qkv_w = qkv_w.astype(compute_dtype)                   # matmul operands in compute dtype
    out_w = params["out_w"].astype(compute_dtype)
    qkv_b = qkv_b.astype(jnp.float32)                     # biases stay f32 (added to f32 acc)
    out_b = params["out_b"].astype(jnp.float32)
    weights = (qkv_w, qkv_b, out_w, out_b)

    # ---- generation-aware VMEM budgeting ------------------------------------
    try:
        vmem_cap = int(pltpu.get_tpu_info().vmem_capacity_bytes)
    except Exception:
        vmem_cap = 64 * 2**20                             # conservative (v7x per-core)
    # ~48 MiB on v7x (64 MiB physical), ~96 MiB on v5e/v6e (128 MiB).
    vmem_target = min((vmem_cap * 3) // 4, vmem_cap - 16 * 2**20)

    weight_buf = 1 if single_buffer_weights else 2
    weight_bytes = weight_buf * sum(int(w.size) * w.dtype.itemsize for w in weights)
    act_budget = max(1 << 20, vmem_target - weight_bytes - (4 << 20))

    x_itemsize = x.dtype.itemsize
    cd_itemsize = jnp.dtype(compute_dtype).itemsize

    # ---- how many batch elements to fuse per grid step ----------------------
    if batch_block is None:
        # Keep >= 2 parallel grid steps so both v7x TensorCores get work.
        bb = B // 2 if B >= 2 else B
        while bb > 1 and (B % bb or
                          _working_set_bytes(bb, S, D, x_itemsize, cd_itemsize) > act_budget):
            bb -= 1
        batch_block = max(bb, 1)
    assert B % batch_block == 0
    grid = (B // batch_block,)

    act_bytes = _working_set_bytes(batch_block, S, D, x_itemsize, cd_itemsize)
    vmem_limit = int(min(vmem_target, max(32 << 20, 2 * (act_bytes + weight_bytes))))

    # ---- BlockSpecs ----------------------------------------------------------
    x_spec = pl.BlockSpec((batch_block, S, D), lambda i: (i, 0, 0))
    o_spec = pl.BlockSpec((batch_block, S, D), lambda i: (i, 0, 0))

    def weight_spec(shape):
        index_map = lambda i: (0,) * len(shape)
        if single_buffer_weights and hasattr(pl, "Buffered"):
            try:
                # Constant block index across the grid -> fetch once, no 2x VMEM.
                return pl.BlockSpec(shape, index_map, pipeline_mode=pl.Buffered(1))
            except Exception:
                pass
        return pl.BlockSpec(shape, index_map)

    in_specs = [x_spec] + [weight_spec(w.shape) for w in weights]

    kernel = functools.partial(_mha_kernel, num_heads=num_heads,
                               compute_dtype=compute_dtype,
                               approx_recip=approx_recip)

    return pl.pallas_call(
        kernel,
        out_shape=jax.ShapeDtypeStruct((B, S, D), x.dtype),
        grid_spec=pltpu.PrefetchScalarGridSpec(
            num_scalar_prefetch=0,
            grid=grid,
            in_specs=in_specs,
            out_specs=o_spec,
        ),
        compiler_params=pltpu.CompilerParams(
            dimension_semantics=("parallel",),
            vmem_limit_bytes=vmem_limit,
        ),
    )(x, *weights)


# ------------------------- parameter init & reference -----------------------

def init_mha_params(key, d_model):
    k1, k2, k3, k4 = jax.random.split(key, 4)
    s = 1.0 / math.sqrt(d_model)
    return {
        # Linear weights stored as (in_features, out_features) == W^T of torch.
        "qkv_w": jax.random.uniform(k1, (d_model, 3 * d_model), jnp.float32, -s, s),
        "qkv_b": jax.random.uniform(k2, (1, 3 * d_model), jnp.float32, -s, s),
        "out_w": jax.random.uniform(k3, (d_model, d_model), jnp.float32, -s, s),
        "out_b": jax.random.uniform(k4, (1, d_model), jnp.float32, -s, s),
    }


def reference_mha(x, params, num_heads):
    """Pure-JAX reference matching the PyTorch forward (mask=None), f32 matmuls."""
    B, S, D = x.shape
    hd = D // num_heads
    hp = jax.lax.Precision.HIGHEST
    qkv = jnp.dot(x, params["qkv_w"], precision=hp) + params["qkv_b"][0]
    qkv = qkv.reshape(B, S, 3, num_heads, hd).transpose(2, 0, 3, 1, 4)
    q, k, v = qkv[0], qkv[1], qkv[2]
    attn = jnp.einsum("bhqd,bhkd->bhqk", q, k, precision=hp) / math.sqrt(hd)
    attn = jax.nn.softmax(attn, axis=-1)
    out = jnp.einsum("bhqk,bhkd->bhqd", attn, v, precision=hp)
    out = out.transpose(0, 2, 1, 3).reshape(B, S, D)
    return jnp.dot(out, params["out_w"], precision=hp) + params["out_b"][0]


if __name__ == "__main__":
    # Small config consistent with the module: d_model=32, num_heads=4, B=2, S=8.
    d_model, num_heads = 32, 4
    B, S = 2, 8

    key = jax.random.PRNGKey(0)
    kx, kw = jax.random.split(key)
    x = jax.random.normal(kx, (B, S, d_model), dtype=jnp.float32)
    params = init_mha_params(kw, d_model)

    # f32 matmul path, exact softmax normalization.
    single_buffer = True
    try:
        out = jax.block_until_ready(multi_head_attention(x, params, num_heads))
    except Exception:
        # Fallback for JAX versions that reject single-buffered weight specs.
        single_buffer = False
        out = jax.block_until_ready(
            multi_head_attention(x, params, num_heads,
                                 single_buffer_weights=False))

    ref = reference_mha(x, params, num_heads)
    assert out.shape == (B, S, d_model)
    assert jnp.allclose(out, ref, atol=1e-3, rtol=1e-3), "f32 mismatch vs reference"

    # bf16 matmul inputs with f32 accumulation — fast path on every generation.
    out_bf16 = jax.block_until_ready(
        multi_head_attention(x, params, num_heads,
                             compute_dtype=jnp.bfloat16,
                             single_buffer_weights=single_buffer))
    assert jnp.allclose(out_bf16, ref, atol=5e-2, rtol=5e-2), "bf16 mismatch vs reference"

    print("KERNEL_OK")
</pallas_src>

<mosaic_0001>
module attributes {stable_mosaic.version = 11 : i64} {
  func.func @_mha_kernel(%arg0: i32, %arg1: memref<1x8x32xf32, #tpu.memory_space<vmem>>, %arg2: memref<32x96xf32, #tpu.memory_space<vmem>>, %arg3: memref<1x96xf32, #tpu.memory_space<vmem>>, %arg4: memref<32x32xf32, #tpu.memory_space<vmem>>, %arg5: memref<1x32xf32, #tpu.memory_space<vmem>>, %arg6: memref<1x8x32xf32, #tpu.memory_space<vmem>>) attributes {dimension_semantics = [#tpu.dimension_semantics<parallel>], iteration_bounds = array<i64: 2>, scalar_prefetch = 0 : i64, scratch_operands = 0 : i64, tpu.core_type = #tpu.core_type<tc>, window_params = [{transform_indices = @transform_0, window_bounds = array<i64: 1, 8, 32>}, {pipeline_mode = #tpu.pipeline_mode<synchronous>, transform_indices = @transform_1, window_bounds = array<i64: 32, 96>}, {pipeline_mode = #tpu.pipeline_mode<synchronous>, transform_indices = @transform_2, window_bounds = array<i64: 1, 96>}, {pipeline_mode = #tpu.pipeline_mode<synchronous>, transform_indices = @transform_3, window_bounds = array<i64: 32, 32>}, {pipeline_mode = #tpu.pipeline_mode<synchronous>, transform_indices = @transform_4, window_bounds = array<i64: 1, 32>}, {transform_indices = @transform_5, window_bounds = array<i64: 1, 8, 32>}]} {
    %c0 = arith.constant 0 : index
    %c0_0 = arith.constant 0 : index
    %c0_1 = arith.constant 0 : index
    %0 = vector.load %arg1[%c0, %c0_0, %c0_1] : memref<1x8x32xf32, #tpu.memory_space<vmem>>, vector<1x8x32xf32>
    %1 = vector.shape_cast %0 : vector<1x8x32xf32> to vector<8x32xf32>
    %c0_2 = arith.constant 0 : index
    %c0_3 = arith.constant 0 : index
    %2 = vector.load %arg2[%c0_2, %c0_3] : memref<32x96xf32, #tpu.memory_space<vmem>>, vector<32x96xf32>
    %cst = arith.constant dense<0.000000e+00> : vector<8x96xf32>
    %3 = tpu.matmul %1, %2, %cst {dimension_numbers = #tpu.dot_dimension_numbers<[1], [0], [0], [1], [0, 0, 1, 1], [], []>} : vector<8x32xf32>, vector<32x96xf32>, vector<8x96xf32> -> vector<8x96xf32>
    %c0_4 = arith.constant 0 : index
    %c0_5 = arith.constant 0 : index
    %4 = vector.load %arg3[%c0_4, %c0_5] : memref<1x96xf32, #tpu.memory_space<vmem>>, vector<1x96xf32>
    %5 = vector.broadcast %4 : vector<1x96xf32> to vector<8x96xf32>
    %6 = arith.addf %3, %5 : vector<8x96xf32>
    %7 = vector.shape_cast %6 : vector<8x96xf32> to vector<1x8x96xf32>
    %cst_6 = arith.constant 0.000000e+00 : f32
    %8 = vector.broadcast %cst_6 : f32 to vector<8x32xf32>
    %9 = vector.extract_strided_slice %7 {offsets = [0, 0, 0], sizes = [1, 8, 8], strides = [1, 1, 1]} : vector<1x8x96xf32> to vector<1x8x8xf32>
    %10 = vector.extract_strided_slice %7 {offsets = [0, 0, 32], sizes = [1, 8, 8], strides = [1, 1, 1]} : vector<1x8x96xf32> to vector<1x8x8xf32>
    %11 = vector.extract_strided_slice %7 {offsets = [0, 0, 64], sizes = [1, 8, 8], strides = [1, 1, 1]} : vector<1x8x96xf32> to vector<1x8x8xf32>
    %cst_7 = arith.constant dense<0.000000e+00> : vector<1x8x8xf32>
    %12 = tpu.matmul %9, %10, %cst_7 {dimension_numbers = #tpu.dot_dimension_numbers<[2], [2], [1], [1], [0, 0, 0, 1, 1, 1], [0], [0]>} : vector<1x8x8xf32>, vector<1x8x8xf32>, vector<1x8x8xf32> -> vector<1x8x8xf32>
    %cst_8 = arith.constant dense<0xFF800000> : vector<1x8xf32>
    %13 = vector.multi_reduction <maximumf>, %12, %cst_8 [2] : vector<1x8x8xf32> to vector<1x8xf32>
    %14 = vector.shape_cast %13 : vector<1x8xf32> to vector<1x8x1xf32>
    %15 = vector.broadcast %14 : vector<1x8x1xf32> to vector<1x8x8xf32>
    %16 = arith.subf %12, %15 : vector<1x8x8xf32>
    %17 = math.exp %16 : vector<1x8x8xf32>
    %cst_9 = arith.constant dense<0.000000e+00> : vector<1x8xf32>
    %18 = vector.multi_reduction <add>, %17, %cst_9 [2] : vector<1x8x8xf32> to vector<1x8xf32>
    %19 = vector.shape_cast %18 : vector<1x8xf32> to vector<1x8x1xf32>
    %cst_10 = arith.constant dense<0.000000e+00> : vector<1x8x8xf32>
    %20 = tpu.matmul %17, %11, %cst_10 {dimension_numbers = #tpu.dot_dimension_numbers<[2], [1], [1], [2], [0, 0, 0, 1, 1, 2], [0], [0]>} : vector<1x8x8xf32>, vector<1x8x8xf32>, vector<1x8x8xf32> -> vector<1x8x8xf32>
    %21 = tpu.reciprocal %19 : vector<1x8x1xf32> -> vector<1x8x1xf32>
    %22 = vector.broadcast %21 : vector<1x8x1xf32> to vector<1x8x8xf32>
    %23 = arith.mulf %20, %22 : vector<1x8x8xf32>
    %24 = vector.shape_cast %23 : vector<1x8x8xf32> to vector<8x8xf32>
    %c0_11 = arith.constant 0 : index
    %c0_12 = arith.constant 0 : index
    %25 = vector.load %arg4[%c0_11, %c0_12] : memref<32x32xf32, #tpu.memory_space<vmem>>, vector<8x32xf32>
    %cst_13 = arith.constant dense<0.000000e+00> : vector<8x32xf32>
    %26 = tpu.matmul %24, %25, %cst_13 {dimension_numbers = #tpu.dot_dimension_numbers<[1], [0], [0], [1], [0, 0, 1, 1], [], []>} : vector<8x8xf32>, vector<8x32xf32>, vector<8x32xf32> -> vector<8x32xf32>
    %27 = arith.addf %8, %26 : vector<8x32xf32>
    %28 = vector.extract_strided_slice %7 {offsets = [0, 0, 8], sizes = [1, 8, 8], strides = [1, 1, 1]} : vector<1x8x96xf32> to vector<1x8x8xf32>
    %29 = vector.extract_strided_slice %7 {offsets = [0, 0, 40], sizes = [1, 8, 8], strides = [1, 1, 1]} : vector<1x8x96xf32> to vector<1x8x8xf32>
    %30 = vector.extract_strided_slice %7 {offsets = [0, 0, 72], sizes = [1, 8, 8], strides = [1, 1, 1]} : vector<1x8x96xf32> to vector<1x8x8xf32>
    %cst_14 = arith.constant dense<0.000000e+00> : vector<1x8x8xf32>
    %31 = tpu.matmul %28, %29, %cst_14 {dimension_numbers = #tpu.dot_dimension_numbers<[2], [2], [1], [1], [0, 0, 0, 1, 1, 1], [0], [0]>} : vector<1x8x8xf32>, vector<1x8x8xf32>, vector<1x8x8xf32> -> vector<1x8x8xf32>
    %cst_15 = arith.constant dense<0xFF800000> : vector<1x8xf32>
    %32 = vector.multi_reduction <maximumf>, %31, %cst_15 [2] : vector<1x8x8xf32> to vector<1x8xf32>
    %33 = vector.shape_cast %32 : vector<1x8xf32> to vector<1x8x1xf32>
    %34 = vector.broadcast %33 : vector<1x8x1xf32> to vector<1x8x8xf32>
    %35 = arith.subf %31, %34 : vector<1x8x8xf32>
    %36 = math.exp %35 : vector<1x8x8xf32>
    %cst_16 = arith.constant dense<0.000000e+00> : vector<1x8xf32>
    %37 = vector.multi_reduction <add>, %36, %cst_16 [2] : vector<1x8x8xf32> to vector<1x8xf32>
    %38 = vector.shape_cast %37 : vector<1x8xf32> to vector<1x8x1xf32>
    %cst_17 = arith.constant dense<0.000000e+00> : vector<1x8x8xf32>
    %39 = tpu.matmul %36, %30, %cst_17 {dimension_numbers = #tpu.dot_dimension_numbers<[2], [1], [1], [2], [0, 0, 0, 1, 1, 2], [0], [0]>} : vector<1x8x8xf32>, vector<1x8x8xf32>, vector<1x8x8xf32> -> vector<1x8x8xf32>
    %40 = tpu.reciprocal %38 : vector<1x8x1xf32> -> vector<1x8x1xf32>
    %41 = vector.broadcast %40 : vector<1x8x1xf32> to vector<1x8x8xf32>
    %42 = arith.mulf %39, %41 : vector<1x8x8xf32>
    %43 = vector.shape_cast %42 : vector<1x8x8xf32> to vector<8x8xf32>
    %c8 = arith.constant 8 : index
    %c0_18 = arith.constant 0 : index
    %44 = vector.load %arg4[%c8, %c0_18] : memref<32x32xf32, #tpu.memory_space<vmem>>, vector<8x32xf32>
    %cst_19 = arith.constant dense<0.000000e+00> : vector<8x32xf32>
    %45 = tpu.matmul %43, %44, %cst_19 {dimension_numbers = #tpu.dot_dimension_numbers<[1], [0], [0], [1], [0, 0, 1, 1], [], []>} : vector<8x8xf32>, vector<8x32xf32>, vector<8x32xf32> -> vector<8x32xf32>
    %46 = arith.addf %27, %45 : vector<8x32xf32>
    %47 = vector.extract_strided_slice %7 {offsets = [0, 0, 16], sizes = [1, 8, 8], strides = [1, 1, 1]} : vector<1x8x96xf32> to vector<1x8x8xf32>
    %48 = vector.extract_strided_slice %7 {offsets = [0, 0, 48], sizes = [1, 8, 8], strides = [1, 1, 1]} : vector<1x8x96xf32> to vector<1x8x8xf32>
    %49 = vector.extract_strided_slice %7 {offsets = [0, 0, 80], sizes = [1, 8, 8], strides = [1, 1, 1]} : vector<1x8x96xf32> to vector<1x8x8xf32>
    %cst_20 = arith.constant dense<0.000000e+00> : vector<1x8x8xf32>
    %50 = tpu.matmul %47, %48, %cst_20 {dimension_numbers = #tpu.dot_dimension_numbers<[2], [2], [1], [1], [0, 0, 0, 1, 1, 1], [0], [0]>} : vector<1x8x8xf32>, vector<1x8x8xf32>, vector<1x8x8xf32> -> vector<1x8x8xf32>
    %cst_21 = arith.constant dense<0xFF800000> : vector<1x8xf32>
    %51 = vector.multi_reduction <maximumf>, %50, %cst_21 [2] : vector<1x8x8xf32> to vector<1x8xf32>
    %52 = vector.shape_cast %51 : vector<1x8xf32> to vector<1x8x1xf32>
    %53 = vector.broadcast %52 : vector<1x8x1xf32> to vector<1x8x8xf32>
    %54 = arith.subf %50, %53 : vector<1x8x8xf32>
    %55 = math.exp %54 : vector<1x8x8xf32>
    %cst_22 = arith.constant dense<0.000000e+00> : vector<1x8xf32>
    %56 = vector.multi_reduction <add>, %55, %cst_22 [2] : vector<1x8x8xf32> to vector<1x8xf32>
    %57 = vector.shape_cast %56 : vector<1x8xf32> to vector<1x8x1xf32>
    %cst_23 = arith.constant dense<0.000000e+00> : vector<1x8x8xf32>
    %58 = tpu.matmul %55, %49, %cst_23 {dimension_numbers = #tpu.dot_dimension_numbers<[2], [1], [1], [2], [0, 0, 0, 1, 1, 2], [0], [0]>} : vector<1x8x8xf32>, vector<1x8x8xf32>, vector<1x8x8xf32> -> vector<1x8x8xf32>
    %59 = tpu.reciprocal %57 : vector<1x8x1xf32> -> vector<1x8x1xf32>
    %60 = vector.broadcast %59 : vector<1x8x1xf32> to vector<1x8x8xf32>
    %61 = arith.mulf %58, %60 : vector<1x8x8xf32>
    %62 = vector.shape_cast %61 : vector<1x8x8xf32> to vector<8x8xf32>
    %c16 = arith.constant 16 : index
    %c0_24 = arith.constant 0 : index
    %63 = vector.load %arg4[%c16, %c0_24] : memref<32x32xf32, #tpu.memory_space<vmem>>, vector<8x32xf32>
    %cst_25 = arith.constant dense<0.000000e+00> : vector<8x32xf32>
    %64 = tpu.matmul %62, %63, %cst_25 {dimension_numbers = #tpu.dot_dimension_numbers<[1], [0], [0], [1], [0, 0, 1, 1], [], []>} : vector<8x8xf32>, vector<8x32xf32>, vector<8x32xf32> -> vector<8x32xf32>
    %65 = arith.addf %46, %64 : vector<8x32xf32>
    %66 = vector.extract_strided_slice %7 {offsets = [0, 0, 24], sizes = [1, 8, 8], strides = [1, 1, 1]} : vector<1x8x96xf32> to vector<1x8x8xf32>
    %67 = vector.extract_strided_slice %7 {offsets = [0, 0, 56], sizes = [1, 8, 8], strides = [1, 1, 1]} : vector<1x8x96xf32> to vector<1x8x8xf32>
    %68 = vector.extract_strided_slice %7 {offsets = [0, 0, 88], sizes = [1, 8, 8], strides = [1, 1, 1]} : vector<1x8x96xf32> to vector<1x8x8xf32>
    %cst_26 = arith.constant dense<0.000000e+00> : vector<1x8x8xf32>
    %69 = tpu.matmul %66, %67, %cst_26 {dimension_numbers = #tpu.dot_dimension_numbers<[2], [2], [1], [1], [0, 0, 0, 1, 1, 1], [0], [0]>} : vector<1x8x8xf32>, vector<1x8x8xf32>, vector<1x8x8xf32> -> vector<1x8x8xf32>
    %cst_27 = arith.constant dense<0xFF800000> : vector<1x8xf32>
    %70 = vector.multi_reduction <maximumf>, %69, %cst_27 [2] : vector<1x8x8xf32> to vector<1x8xf32>
    %71 = vector.shape_cast %70 : vector<1x8xf32> to vector<1x8x1xf32>
    %72 = vector.broadcast %71 : vector<1x8x1xf32> to vector<1x8x8xf32>
    %73 = arith.subf %69, %72 : vector<1x8x8xf32>
    %74 = math.exp %73 : vector<1x8x8xf32>
    %cst_28 = arith.constant dense<0.000000e+00> : vector<1x8xf32>
    %75 = vector.multi_reduction <add>, %74, %cst_28 [2] : vector<1x8x8xf32> to vector<1x8xf32>
    %76 = vector.shape_cast %75 : vector<1x8xf32> to vector<1x8x1xf32>
    %cst_29 = arith.constant dense<0.000000e+00> : vector<1x8x8xf32>
    %77 = tpu.matmul %74, %68, %cst_29 {dimension_numbers = #tpu.dot_dimension_numbers<[2], [1], [1], [2], [0, 0, 0, 1, 1, 2], [0], [0]>} : vector<1x8x8xf32>, vector<1x8x8xf32>, vector<1x8x8xf32> -> vector<1x8x8xf32>
    %78 = tpu.reciprocal %76 : vector<1x8x1xf32> -> vector<1x8x1xf32>
    %79 = vector.broadcast %78 : vector<1x8x1xf32> to vector<1x8x8xf32>
    %80 = arith.mulf %77, %79 : vector<1x8x8xf32>
    %81 = vector.shape_cast %80 : vector<1x8x8xf32> to vector<8x8xf32>
    %c24 = arith.constant 24 : index
    %c0_30 = arith.constant 0 : index
    %82 = vector.load %arg4[%c24, %c0_30] : memref<32x32xf32, #tpu.memory_space<vmem>>, vector<8x32xf32>
    %cst_31 = arith.constant dense<0.000000e+00> : vector<8x32xf32>
    %83 = tpu.matmul %81, %82, %cst_31 {dimension_numbers = #tpu.dot_dimension_numbers<[1], [0], [0], [1], [0, 0, 1, 1], [], []>} : vector<8x8xf32>, vector<8x32xf32>, vector<8x32xf32> -> vector<8x32xf32>
    %84 = arith.addf %65, %83 : vector<8x32xf32>
    %c0_32 = arith.constant 0 : index
    %c0_33 = arith.constant 0 : index
    %85 = vector.load %arg5[%c0_32, %c0_33] : memref<1x32xf32, #tpu.memory_space<vmem>>, vector<1x32xf32>
    %86 = vector.broadcast %85 : vector<1x32xf32> to vector<8x32xf32>
    %87 = arith.addf %84, %86 : vector<8x32xf32>
    %88 = vector.shape_cast %87 : vector<8x32xf32> to vector<1x8x32xf32>
    %c0_34 = arith.constant 0 : index
    %c0_35 = arith.constant 0 : index
    %c0_36 = arith.constant 0 : index
    %89 = vector.load %arg6[%c0_34, %c0_35, %c0_36] : memref<1x8x32xf32, #tpu.memory_space<vmem>>, vector<1x8x32xf32>
    tpu.vector_store %arg6[%c0_34, %c0_35, %c0_36], %88 {strides = array<i32>} : memref<1x8x32xf32, #tpu.memory_space<vmem>>, vector<1x8x32xf32>,
    return
  }
  func.func @transform_0(%arg0: i32) -> (i32, i32, i32) {
    %c0_i32 = arith.constant 0 : i32
    %c0_i32_0 = arith.constant 0 : i32
    %c0_i32_1 = arith.constant 0 : i32
    return %arg0, %c0_i32, %c0_i32_0 : i32, i32, i32
  }
  func.func @transform_1(%arg0: i32) -> (i32, i32) {
    %c0_i32 = arith.constant 0 : i32
    %c0_i32_0 = arith.constant 0 : i32
    %c0_i32_1 = arith.constant 0 : i32
    return %c0_i32, %c0_i32_0 : i32, i32
  }
  func.func @transform_2(%arg0: i32) -> (i32, i32) {
    %c0_i32 = arith.constant 0 : i32
    %c0_i32_0 = arith.constant 0 : i32
    %c0_i32_1 = arith.constant 0 : i32
    return %c0_i32, %c0_i32_0 : i32, i32
  }
  func.func @transform_3(%arg0: i32) -> (i32, i32) {
    %c0_i32 = arith.constant 0 : i32
    %c0_i32_0 = arith.constant 0 : i32
    %c0_i32_1 = arith.constant 0 : i32
    return %c0_i32, %c0_i32_0 : i32, i32
  }
  func.func @transform_4(%arg0: i32) -> (i32, i32) {
    %c0_i32 = arith.constant 0 : i32
    %c0_i32_0 = arith.constant 0 : i32
    %c0_i32_1 = arith.constant 0 : i32
    return %c0_i32, %c0_i32_0 : i32, i32
  }
  func.func @transform_5(%arg0: i32) -> (i32, i32, i32) {
    %c0_i32 = arith.constant 0 : i32
    %c0_i32_0 = arith.constant 0 : i32
    %c0_i32_1 = arith.constant 0 : i32
    return %arg0, %c0_i32, %c0_i32_0 : i32, i32, i32
  }
}

module attributes {stable_mosaic.version = 11 : i64} {
  func.func @_mha_kernel(%arg0: i32, %arg1: memref<1x8x32xf32, #tpu.memory_space<vmem>>, %arg2: memref<32x96xf32, #tpu.memory_space<vmem>>, %arg3: memref<1x96xf32, #tpu.memory_space<vmem>>, %arg4: memref<32x32xf32, #tpu.memory_space<vmem>>, %arg5: memref<1x32xf32, #tpu.memory_space<vmem>>, %arg6: memref<1x8x32xf32, #tpu.memory_space<vmem>>) attributes {dimension_semantics = [#tpu.dimension_semantics<parallel>], iteration_bounds = array<i64: 2>, scalar_prefetch = 0 : i64, scratch_operands = 0 : i64, tpu.core_type = #tpu.core_type<tc>, window_params = [{transform_indices = @transform_0, window_bounds = array<i64: 1, 8, 32>}, {pipeline_mode = #tpu.pipeline_mode<synchronous>, transform_indices = @transform_1, window_bounds = array<i64: 32, 96>}, {pipeline_mode = #tpu.pipeline_mode<synchronous>, transform_indices = @transform_2, window_bounds = array<i64: 1, 96>}, {pipeline_mode = #tpu.pipeline_mode<synchronous>, transform_indices = @transform_3, window_bounds = array<i64: 32, 32>}, {pipeline_mode = #tpu.pipeline_mode<synchronous>, transform_indices = @transform_4, window_bounds = array<i64: 1, 32>}, {transform_indices = @transform_5, window_bounds = array<i64: 1, 8, 32>}]} {
    %c0 = arith.constant 0 : index
    %c0_0 = arith.constant 0 : index
    %c0_1 = arith.constant 0 : index
    %0 = vector.load %arg1[%c0, %c0_0, %c0_1] : memref<1x8x32xf32, #tpu.memory_space<vmem>>, vector<1x8x32xf32>
    %1 = vector.shape_cast %0 : vector<1x8x32xf32> to vector<8x32xf32>
    %c0_2 = arith.constant 0 : index
    %c0_3 = arith.constant 0 : index
    %2 = vector.load %arg2[%c0_2, %c0_3] : memref<32x96xf32, #tpu.memory_space<vmem>>, vector<32x96xf32>
    %cst = arith.constant dense<0.000000e+00> : vector<8x96xf32>
    %3 = tpu.matmul %1, %2, %cst {dimension_numbers = #tpu.dot_dimension_numbers<[1], [0], [0], [1], [0, 0, 1, 1], [], []>} : vector<8x32xf32>, vector<32x96xf32>, vector<8x96xf32> -> vector<8x96xf32>
    %c0_4 = arith.constant 0 : index
    %c0_5 = arith.constant 0 : index
    %4 = vector.load %arg3[%c0_4, %c0_5] : memref<1x96xf32, #tpu.memory_space<vmem>>, vector<1x96xf32>
    %5 = vector.broadcast %4 : vector<1x96xf32> to vector<8x96xf32>
    %6 = arith.addf %3, %5 : vector<8x96xf32>
    %7 = vector.shape_cast %6 : vector<8x96xf32> to vector<1x8x96xf32>
    %cst_6 = arith.constant 0.000000e+00 : f32
    %8 = vector.broadcast %cst_6 : f32 to vector<8x32xf32>
    %9 = vector.extract_strided_slice %7 {offsets = [0, 0, 0], sizes = [1, 8, 8], strides = [1, 1, 1]} : vector<1x8x96xf32> to vector<1x8x8xf32>
    %10 = vector.extract_strided_slice %7 {offsets = [0, 0, 32], sizes = [1, 8, 8], strides = [1, 1, 1]} : vector<1x8x96xf32> to vector<1x8x8xf32>
    %11 = vector.extract_strided_slice %7 {offsets = [0, 0, 64], sizes = [1, 8, 8], strides = [1, 1, 1]} : vector<1x8x96xf32> to vector<1x8x8xf32>
    %cst_7 = arith.constant dense<0.000000e+00> : vector<1x8x8xf32>
    %12 = tpu.matmul %9, %10, %cst_7 {dimension_numbers = #tpu.dot_dimension_numbers<[2], [2], [1], [1], [0, 0, 0, 1, 1, 1], [0], [0]>} : vector<1x8x8xf32>, vector<1x8x8xf32>, vector<1x8x8xf32> -> vector<1x8x8xf32>
    %cst_8 = arith.constant dense<0xFF800000> : vector<1x8xf32>
    %13 = vector.multi_reduction <maximumf>, %12, %cst_8 [2] : vector<1x8x8xf32> to vector<1x8xf32>
    %14 = vector.shape_cast %13 : vector<1x8xf32> to vector<1x8x1xf32>
    %15 = vector.broadcast %14 : vector<1x8x1xf32> to vector<1x8x8xf32>
    %16 = arith.subf %12, %15 : vector<1x8x8xf32>
    %17 = math.exp %16 : vector<1x8x8xf32>
    %cst_9 = arith.constant dense<0.000000e+00> : vector<1x8xf32>
    %18 = vector.multi_reduction <add>, %17, %cst_9 [2] : vector<1x8x8xf32> to vector<1x8xf32>
    %19 = vector.shape_cast %18 : vector<1x8xf32> to vector<1x8x1xf32>
    %cst_10 = arith.constant dense<0.000000e+00> : vector<1x8x8xf32>
    %20 = tpu.matmul %17, %11, %cst_10 {dimension_numbers = #tpu.dot_dimension_numbers<[2], [1], [1], [2], [0, 0, 0, 1, 1, 2], [0], [0]>} : vector<1x8x8xf32>, vector<1x8x8xf32>, vector<1x8x8xf32> -> vector<1x8x8xf32>
    %21 = tpu.reciprocal %19 : vector<1x8x1xf32> -> vector<1x8x1xf32>
    %22 = vector.broadcast %21 : vector<1x8x1xf32> to vector<1x8x8xf32>
    %23 = arith.mulf %20, %22 : vector<1x8x8xf32>
    %24 = vector.shape_cast %23 : vector<1x8x8xf32> to vector<8x8xf32>
    %c0_11 = arith.constant 0 : index
    %c0_12 = arith.constant 0 : index
    %25 = vector.load %arg4[%c0_11, %c0_12] : memref<32x32xf32, #tpu.memory_space<vmem>>, vector<8x32xf32>
    %cst_13 = arith.constant dense<0.000000e+00> : vector<8x32xf32>
    %26 = tpu.matmul %24, %25, %cst_13 {dimension_numbers = #tpu.dot_dimension_numbers<[1], [0], [0], [1], [0, 0, 1, 1], [], []>} : vector<8x8xf32>, vector<8x32xf32>, vector<8x32xf32> -> vector<8x32xf32>
    %27 = arith.addf %8, %26 : vector<8x32xf32>
    %28 = vector.extract_strided_slice %7 {offsets = [0, 0, 8], sizes = [1, 8, 8], strides = [1, 1, 1]} : vector<1x8x96xf32> to vector<1x8x8xf32>
    %29 = vector.extract_strided_slice %7 {offsets = [0, 0, 40], sizes = [1, 8, 8], strides = [1, 1, 1]} : vector<1x8x96xf32> to vector<1x8x8xf32>
    %30 = vector.extract_strided_slice %7 {offsets = [0, 0, 72], sizes = [1, 8, 8], strides = [1, 1, 1]} : vector<1x8x96xf32> to vector<1x8x8xf32>
    %cst_14 = arith.constant dense<0.000000e+00> : vector<1x8x8xf32>
    %31 = tpu.matmul %28, %29, %cst_14 {dimension_numbers = #tpu.dot_dimension_numbers<[2], [2], [1], [1], [0, 0, 0, 1, 1, 1], [0], [0]>} : vector<1x8x8xf32>, vector<1x8x8xf32>, vector<1x8x8xf32> -> vector<1x8x8xf32>
    %cst_15 = arith.constant dense<0xFF800000> : vector<1x8xf32>
    %32 = vector.multi_reduction <maximumf>, %31, %cst_15 [2] : vector<1x8x8xf32> to vector<1x8xf32>
    %33 = vector.shape_cast %32 : vector<1x8xf32> to vector<1x8x1xf32>
    %34 = vector.broadcast %33 : vector<1x8x1xf32> to vector<1x8x8xf32>
    %35 = arith.subf %31, %34 : vector<1x8x8xf32>
    %36 = math.exp %35 : vector<1x8x8xf32>
    %cst_16 = arith.constant dense<0.000000e+00> : vector<1x8xf32>
    %37 = vector.multi_reduction <add>, %36, %cst_16 [2] : vector<1x8x8xf32> to vector<1x8xf32>
    %38 = vector.shape_cast %37 : vector<1x8xf32> to vector<1x8x1xf32>
    %cst_17 = arith.constant dense<0.000000e+00> : vector<1x8x8xf32>
    %39 = tpu.matmul %36, %30, %cst_17 {dimension_numbers = #tpu.dot_dimension_numbers<[2], [1], [1], [2], [0, 0, 0, 1, 1, 2], [0], [0]>} : vector<1x8x8xf32>, vector<1x8x8xf32>, vector<1x8x8xf32> -> vector<1x8x8xf32>
    %40 = tpu.reciprocal %38 : vector<1x8x1xf32> -> vector<1x8x1xf32>
    %41 = vector.broadcast %40 : vector<1x8x1xf32> to vector<1x8x8xf32>
    %42 = arith.mulf %39, %41 : vector<1x8x8xf32>
    %43 = vector.shape_cast %42 : vector<1x8x8xf32> to vector<8x8xf32>
    %c8 = arith.constant 8 : index
    %c0_18 = arith.constant 0 : index
    %44 = vector.load %arg4[%c8, %c0_18] : memref<32x32xf32, #tpu.memory_space<vmem>>, vector<8x32xf32>
    %cst_19 = arith.constant dense<0.000000e+00> : vector<8x32xf32>
    %45 = tpu.matmul %43, %44, %cst_19 {dimension_numbers = #tpu.dot_dimension_numbers<[1], [0], [0], [1], [0, 0, 1, 1], [], []>} : vector<8x8xf32>, vector<8x32xf32>, vector<8x32xf32> -> vector<8x32xf32>
    %46 = arith.addf %27, %45 : vector<8x32xf32>
    %47 = vector.extract_strided_slice %7 {offsets = [0, 0, 16], sizes = [1, 8, 8], strides = [1, 1, 1]} : vector<1x8x96xf32> to vector<1x8x8xf32>
    %48 = vector.extract_strided_slice %7 {offsets = [0, 0, 48], sizes = [1, 8, 8], strides = [1, 1, 1]} : vector<1x8x96xf32> to vector<1x8x8xf32>
    %49 = vector.extract_strided_slice %7 {offsets = [0, 0, 80], sizes = [1, 8, 8], strides = [1, 1, 1]} : vector<1x8x96xf32> to vector<1x8x8xf32>
    %cst_20 = arith.constant dense<0.000000e+00> : vector<1x8x8xf32>
    %50 = tpu.matmul %47, %48, %cst_20 {dimension_numbers = #tpu.dot_dimension_numbers<[2], [2], [1], [1], [0, 0, 0, 1, 1, 1], [0], [0]>} : vector<1x8x8xf32>, vector<1x8x8xf32>, vector<1x8x8xf32> -> vector<1x8x8xf32>
    %cst_21 = arith.constant dense<0xFF800000> : vector<1x8xf32>
    %51 = vector.multi_reduction <maximumf>, %50, %cst_21 [2] : vector<1x8x8xf32> to vector<1x8xf32>
    %52 = vector.shape_cast %51 : vector<1x8xf32> to vector<1x8x1xf32>
    %53 = vector.broadcast %52 : vector<1x8x1xf32> to vector<1x8x8xf32>
    %54 = arith.subf %50, %53 : vector<1x8x8xf32>
    %55 = math.exp %54 : vector<1x8x8xf32>
    %cst_22 = arith.constant dense<0.000000e+00> : vector<1x8xf32>
    %56 = vector.multi_reduction <add>, %55, %cst_22 [2] : vector<1x8x8xf32> to vector<1x8xf32>
    %57 = vector.shape_cast %56 : vector<1x8xf32> to vector<1x8x1xf32>
    %cst_23 = arith.constant dense<0.000000e+00> : vector<1x8x8xf32>
    %58 = tpu.matmul %55, %49, %cst_23 {dimension_numbers = #tpu.dot_dimension_numbers<[2], [1], [1], [2], [0, 0, 0, 1, 1, 2], [0], [0]>} : vector<1x8x8xf32>, vector<1x8x8xf32>, vector<1x8x8xf32> -> vector<1x8x8xf32>
    %59 = tpu.reciprocal %57 : vector<1x8x1xf32> -> vector<1x8x1xf32>
    %60 = vector.broadcast %59 : vector<1x8x1xf32> to vector<1x8x8xf32>
    %61 = arith.mulf %58, %60 : vector<1x8x8xf32>
    %62 = vector.shape_cast %61 : vector<1x8x8xf32> to vector<8x8xf32>
    %c16 = arith.constant 16 : index
    %c0_24 = arith.constant 0 : index
    %63 = vector.load %arg4[%c16, %c0_24] : memref<32x32xf32, #tpu.memory_space<vmem>>, vector<8x32xf32>
    %cst_25 = arith.constant dense<0.000000e+00> : vector<8x32xf32>
    %64 = tpu.matmul %62, %63, %cst_25 {dimension_numbers = #tpu.dot_dimension_numbers<[1], [0], [0], [1], [0, 0, 1, 1], [], []>} : vector<8x8xf32>, vector<8x32xf32>, vector<8x32xf32> -> vector<8x32xf32>
    %65 = arith.addf %46, %64 : vector<8x32xf32>
    %66 = vector.extract_strided_slice %7 {offsets = [0, 0, 24], sizes = [1, 8, 8], strides = [1, 1, 1]} : vector<1x8x96xf32> to vector<1x8x8xf32>
    %67 = vector.extract_strided_slice %7 {offsets = [0, 0, 56], sizes = [1, 8, 8], strides = [1, 1, 1]} : vector<1x8x96xf32> to vector<1x8x8xf32>
    %68 = vector.extract_strided_slice %7 {offsets = [0, 0, 88], sizes = [1, 8, 8], strides = [1, 1, 1]} : vector<1x8x96xf32> to vector<1x8x8xf32>
    %cst_26 = arith.constant dense<0.000000e+00> : vector<1x8x8xf32>
    %69 = tpu.matmul %66, %67, %cst_26 {dimension_numbers = #tpu.dot_dimension_numbers<[2], [2], [1], [1], [0, 0, 0, 1, 1, 1], [0], [0]>} : vector<1x8x8xf32>, vector<1x8x8xf32>, vector<1x8x8xf32> -> vector<1x8x8xf32>
    %cst_27 = arith.constant dense<0xFF800000> : vector<1x8xf32>
    %70 = vector.multi_reduction <maximumf>, %69, %cst_27 [2] : vector<1x8x8xf32> to vector<1x8xf32>
    %71 = vector.shape_cast %70 : vector<1x8xf32> to vector<1x8x1xf32>
    %72 = vector.broadcast %71 : vector<1x8x1xf32> to vector<1x8x8xf32>
    %73 = arith.subf %69, %72 : vector<1x8x8xf32>
    %74 = math.exp %73 : vector<1x8x8xf32>
    %cst_28 = arith.constant dense<0.000000e+00> : vector<1x8xf32>
    %75 = vector.multi_reduction <add>, %74, %cst_28 [2] : vector<1x8x8xf32> to vector<1x8xf32>
    %76 = vector.shape_cast %75 : vector<1x8xf32> to vector<1x8x1xf32>
    %cst_29 = arith.constant dense<0.000000e+00> : vector<1x8x8xf32>
    %77 = tpu.matmul %74, %68, %cst_29 {dimension_numbers = #tpu.dot_dimension_numbers<[2], [1], [1], [2], [0, 0, 0, 1, 1, 2], [0], [0]>} : vector<1x8x8xf32>, vector<1x8x8xf32>, vector<1x8x8xf32> -> vector<1x8x8xf32>
    %78 = tpu.reciprocal %76 : vector<1x8x1xf32> -> vector<1x8x1xf32>
    %79 = vector.broadcast %78 : vector<1x8x1xf32> to vector<1x8x8xf32>
    %80 = arith.mulf %77, %79 : vector<1x8x8xf32>
    %81 = vector.shape_cast %80 : vector<1x8x8xf32> to vector<8x8xf32>
    %c24 = arith.constant 24 : index
    %c0_30 = arith.constant 0 : index
    %82 = vector.load %arg4[%c24, %c0_30] : memref<32x32xf32, #tpu.memory_space<vmem>>, vector<8x32xf32>
    %cst_31 = arith.constant dense<0.000000e+00> : vector<8x32xf32>
    %83 = tpu.matmul %81, %82, %cst_31 {dimension_numbers = #tpu.dot_dimension_numbers<[1], [0], [0], [1], [0, 0, 1, 1], [], []>} : vector<8x8xf32>, vector<8x32xf32>, vector<8x32xf32> -> vector<8x32xf32>
    %84 = arith.addf %65, %83 : vector<8x32xf32>
    %c0_32 = arith.constant 0 : index
    %c0_33 = arith.constant 0 : index
    %85 = vector.load %arg5[%c0_32, %c0_33] : memref<1x32xf32, #tpu.memory_space<vmem>>, vector<1x32xf32>
    %86 = vector.broadcast %85 : vector<1x32xf32> to vector<8x32xf32>
    %87 = arith.addf %84, %86 : vector<8x32xf32>
    %88 = vector.shape_cast %87 : vector<8x32xf32> to vector<1x8x32xf32>
    %c0_34 = arith.constant 0 : index
    %c0_35 = arith.constant 0 : index
    %c0_36 = arith.constant 0 : index
    %89 = vector.load %arg6[%c0_34, %c0_35, %c0_36] : memref<1x8x32xf32, #tpu.memory_space<vmem>>, vector<1x8x32xf32>
    tpu.vector_store %arg6[%c0_34, %c0_35, %c0_36], %88 {strides = array<i32>} : memref<1x8x32xf32, #tpu.memory_space<vmem>>, vector<1x8x32xf32>,
    return
  }
  func.func @transform_0(%arg0: i32) -> (i32, i32, i32) {
    %c0_i32 = arith.constant 0 : i32
    %c0_i32_0 = arith.constant 0 : i32
    %c0_i32_1 = arith.constant 0 : i32
    return %arg0, %c0_i32, %c0_i32_0 : i32, i32, i32
  }
  func.func @transform_1(%arg0: i32) -> (i32, i32) {
    %c0_i32 = arith.constant 0 : i32
    %c0_i32_0 = arith.constant 0 : i32
    %c0_i32_1 = arith.constant 0 : i32
    return %c0_i32, %c0_i32_0 : i32, i32
  }
  func.func @transform_2(%arg0: i32) -> (i32, i32) {
    %c0_i32 = arith.constant 0 : i32
    %c0_i32_0 = arith.constant 0 : i32
    %c0_i32_1 = arith.constant 0 : i32
    return %c0_i32, %c0_i32_0 : i32, i32
  }
  func.func @transform_3(%arg0: i32) -> (i32, i32) {
    %c0_i32 = arith.constant 0 : i32
    %c0_i32_0 = arith.constant 0 : i32
    %c0_i32_1 = arith.constant 0 : i32
    return %c0_i32, %c0_i32_0 : i32, i32
  }
  func.func @transform_4(%arg0: i32) -> (i32, i32) {
    %c0_i32 = arith.constant 0 : i32
    %c0_i32_0 = arith.constant 0 : i32
    %c0_i32_1 = arith.constant 0 : i32
    return %c0_i32, %c0_i32_0 : i32, i32
  }
  func.func @transform_5(%arg0: i32) -> (i32, i32, i32) {
    %c0_i32 = arith.constant 0 : i32
    %c0_i32_0 = arith.constant 0 : i32
    %c0_i32_1 = arith.constant 0 : i32
    return %arg0, %c0_i32, %c0_i32_0 : i32, i32, i32
  }
}

</mosaic_0001>

<bundles_post_ra>
// kernel: tpu_custom_call.1
= control target key start
LH: loop header
LB: loop body
LE: loop exit
PB: predicated region body
PF: predicated region fallthrough
CT: control target
= control target key end

     0   :  { %10 = vsyncpa [#allocation3], 0  ;;  %s1368_s0 = inlined_call_operand.hbm [shape: f32[2,8,32], index: 0, kind: input, shape index: {}]   ;;  %s1369_s1 = inlined_call_operand.hbm [shape: f32[32,96], index: 1, kind: input, shape index: {}]   ;;  %s1370_s2 = inlined_call_operand.vmem [shape: f32[1,96], index: 2, kind: input, shape index: {}]   ;;  %s1371_s3 = inlined_call_operand.hbm [shape: f32[32,32], index: 3, kind: input, shape index: {}]   ;;  %s1372_s4 = inlined_call_operand.vmem [shape: f32[1,32], index: 4, kind: input, shape index: {}]   ;;  %s1373_s5 = inlined_call_operand.hbm [shape: f32[2,8,32], index: 5, kind: output, shape index: {}]  }
   0x1   :  { %12 = vsyncpa [#allocation3 + $0x1], 0 }
   0x2   :  { %13 = vsyncpa [#allocation6], 0 }
   0x3   :  { %14 = vsyncpa [#allocation4], 0 }
   0x4   :  { %16 = vsyncpa [#allocation4 + $0x1], 0  ;;  %s1167_s18 = smov 0   ;;  %s1169_s19 = smov 0  }
   0x5   :  { %s1171_s20 = smov 0   ;;  %s1173_s21 = smov 0  }
   0x6 LB: > { %s174_s24 = sshll.u32 %s1369_s1, 4  ;;  %s1191_s25 = sadd.s32 4294967295, %s1120_s21   ;;  %s1120_s21 = sphi %s1173_s21, %s1384_s21   ;;  %s1116_s20 = sphi %s1171_s20, %s1383_s20   ;;  %s1112_s19 = sphi %s1169_s19, %s1382_s19   ;;  %s1108_s18 = sphi %s1167_s18, %s1381_s18   ;;  %s175_s24 = int_to_ptr.hbm [resolvable:$true] %s174_s24 }
   0x7   : > { %p830_p0 = scmp.ge.s32.totalorder %s1120_s21, 1  ;;  %p43_p1 = scmp.eq.s32.totalorder %s1191_s25, 0 }
   0x8   : > { %p163_p2 = scmp.lt.s32.totalorder %s1120_s21, 3  ;;  %s1122_s27 = smov [#allocation5]  }
   0x9   : > { %s176_s28 = sshll.u32 %s1122_s27, 4  ;;  %s191_s6 = sshll.u32 %s1371_s3, 4  ;;  %s177_s28 = int_to_ptr.vmem [resolvable:$true] %s176_s28  ;;  %s192_s6 = int_to_ptr.hbm [resolvable:$true] %s191_s6 }
   0xa   : > { %p1196_p3 = pnand %p830_p0, %p163_p2  ;;  %s1123_s7 = smov [#allocation7]  }
   0xb   : > { %s193_s8 = sshll.u32 %s1123_s7, 4  ;;  %s1124_s9 = smov 128   ;;  %s194_s8 = int_to_ptr.vmem [resolvable:$true] %s193_s8 }
   0xc   : > { %p874_p4 = pneg %p1196_p3  ;;  %s1125_s10 = smov 8  }
   0xd   : > { %s829_s11 = sadd.s32 4294967294, %s1120_s21   ;;  %s1210_s12 = sadd.s32 1, %s1120_s21  }
   0xe   : > { %p875_p6 = pnand %p874_p4, %p43_p1  ;;  %s26_s13 = ssub.s32 %s1120_s21, %s1210_s12 }
   0xf   : > { %s29_s14 = sadd.s32 1, %s1116_s20  ;;  %p27_p7 = scmp.eq.s32.totalorder %s26_s13, 0 }
  0x10   : > { %877 = dma.hbm_to_vmem [thread:$0]  (!%p875_p6), %s175_s24, 512, %s177_s28, [#allocation6], %s1124_s9, %s1124_s9, %s1125_s10  }
  0x11   : > { %880 = dma.hbm_to_vmem [thread:$0]  (!%p875_p6), %s192_s6, 512, %s194_s8, [#allocation6], %s1124_s9, %s1124_s9, %s1125_s10  }
  0x12   : > { %p36_p8 = scmp.ne.s32.totalorder %s1116_s20, %s1112_s19  ;;  %p37_p9 = scmp.eq.s32.totalorder %s1120_s21, 0 }
  0x13   : > { %p42_p10 = scmp.ne.s32.totalorder %s1112_s19, %s1108_s18  ;;  %p150_p13 = scmp.eq.s32.totalorder %s1191_s25, 1 }
  0x14   : > { %s1221_s15 = scalar_select %p27_p7, %s1116_s20, %s29_s14  }
  0x15   : > { %p1223_p11 = por %p37_p9, %p36_p8  ;;  %p1229_p12 = por %p43_p1, %p42_p10 }
  0x16   : > { %p156_p0 = scmp.eq.s32.totalorder %s829_s11, 1  ;;  %p891_p2 = scmp.lt.s32.totalorder %s1120_s21, 2 }
  0x17   : > { %s210_s22 = sand.u32 1, %s1116_s20   ;;  %p1236_p4 = por %p150_p13, %p36_p8 }
  0x18   : > { %p1240_p6 = por %p156_p0, %p42_p10  ;;  %s834_s27 = sshll.u32 %s210_s22, 3 }
  0x19   : > { %s835_s28 = sshll.u32 %s1120_s21, 3  ;;  %s214_s7 = scalar_lea.vmem [#allocation2], %s834_s27 }
  0x1a   : > { %s218_s6 = scalar_lea.hbm %s1368_s0, %s835_s28  ;;  %s222_s8 = sshll.u32 %s214_s7, 4  ;;  %s223_s8 = int_to_ptr.vmem [resolvable:$true] %s222_s8 }
  0x1b   : > { %s220_s9 = sshll.u32 %s218_s6, 4  ;;  %p1250_p7 = pnand %p891_p2, %p1223_p11  ;;  %s221_s9 = int_to_ptr.hbm [resolvable:$true] %s220_s9 }
  0x1c   : > { %s211_s11 = scalar_lea.sflag [#allocation3], %s210_s22  ;;  %s1020_s13 = sshra.s32 %s221_s9, 4  ;;  %s1021_s13 = int_to_ptr.hbm [resolvable:$true] %s1020_s13 }
  0x1d   : > { %s1022_s14 = scalar_lea.hbm %s1021_s13, 8  ;;  %p1024_p9 = pneg %p1250_p7 }
  0x1e   : > { %p1023_p8 = scmp.ne.s32.totalorder %s1021_s13, %s1022_s14  ;;  %s1027_s29 = scalar_lea.hbm %s1368_s0, 16 }
  0x1f   : > { %p1028_p11 = scmp.lt.s32.totalorder %s1021_s13, %s1368_s0  ;;  %p1029_p0 = scmp.lt.s32.totalorder %s1027_s29, %s1022_s14 }
  0x20   : > { %p1025_p10 = pnand %p1024_p9, %p1023_p8 }
  0x21   : > { %p1030_p2 = por %p1029_p0, %p1028_p11 }
  0x22   : > { %p1026_p13 = pneg %p1025_p10 }
  0x24   : > { %p1031_p5 = pnand %p1030_p2, %p1026_p13 }
  0x26   : > { %1034 = shalt.err (!%p1031_p5)
}
  0x27   : > { %884 = dma.hbm_to_vmem [thread:$0]  (!%p1250_p7), %s221_s9, 128, %s223_s8, %s211_s11  }
  0x28   : > { %231 = sbr.rel (%p1196_p3) target bundleno = 1244 (0x4dc), region = 40  ;;  %s1267_s22 = sand.u32 (!%p1196_p3), 1, %s1112_s19  }
  0x29   : > { %s837_s6 = sshll.u32 (!%p1196_p3), %s1267_s22, 3  ;;  %s234_s7 = scalar_lea.sflag (!%p1196_p3), [#allocation3], %s1267_s22 }
  0x2a   : > { %s237_s13 = scalar_lea.vmem (!%p1196_p3), [#allocation2], %s837_s6 }
  0x2d   : > { %1095 = dma.done.wait (%p1229_p12), %s234_s7, 128  }
  0x2e   : > { %1097 = vsyncadd (%p1229_p12), %s234_s7, 4294967168 }
  0x2f   : > { %1099 = dma.done.wait (%p43_p1), [#allocation6], 1024  }
  0x30   : > { %1101 = vsyncadd (%p43_p1), [#allocation6], 4294966272  ;;  %v279_v0 = vld [vmem:[#allocation5 + $0x18] sm:$0xff]  ;;  %v278_v1 = vld [vmem:[#allocation5 + $0x10] sm:$0xff]  ;;  %vm284_vm0 = vcmask 261120   ;;  %s1126_s8 = smov 88  }
  0x31   : > { %300 = vmatpush.msra.mxu0 %v279_v0  ;;  %v277_v2 = vld [vmem:[#allocation5 + $0x8] sm:$0xff]  ;;  %v276_v3 = vld [vmem:[#allocation5] sm:$0xff]  ;;  %v275_v4 = vld [vmem:[%s237_s13] sm:$0xff]  ;;  %s1127_s9 = smov 64   ;;  %s1128_s10 = smov 96   ;;  %vm311_vm1 = vcmask 64512  }
  0x32   : > { %v942_v5 = vld [vmem:[%s1370_s2] ss:$0 sm:$0xff]  ;;  %s1129_s11 = smov 120   ;;  %s1130_s14 = smov 72   ;;  %v386_v8 = vld [vmem:[#allocation7] sm:$0xff]  ;;  %v465_v62 = vld [vmem:[#allocation7 + $0x8] sm:$0xff] }
  0x33   : > { %301 = vmatpush.msra.mxu0 %v278_v1  ;;  %s1131_s27 = smov 104   ;;  %s1132_s28 = smov 80  }
  0x34   : > { %s1133_s29 = smov 112   ;;  %s1134_s30 = smov 56  }
  0x35   : > { %302 = vmatpush.msra.mxu0 %v277_v2  ;;  %s1135_s16 = smov 40   ;;  %s1136_s7 = smov 48  }
  0x36   : > { %s859_s13 = sshll.u32 %s1191_s25, 3  ;;  %s725_s25 = scalar_lea.sflag [#allocation4], %s1267_s22 }
  0x37   : > { %303 = vmatpush.msra.mxu0 %v276_v3 }
  0x38   : > { %841 = vmatmul.msk.f32.vlgmr.msra.gmra.mxu0 %vm284_vm0, %v275_v4 }
  0xb5   : > { %v305_v6 = vpop.f32.mrf.mxu0 }
  0xb6   : > { %v1285_v7 = vadd.f32 %v942_v5, %v305_v6 }
  0xb8   : > { %389 = vrot.lane.b32.xlu2 %v1285_v7, %s1126_s8  ;;  %345 = vrot.lane.b32.xlu1 %v1285_v7, %s1127_s9  ;;  %s735_s8 = scalar_lea.hbm %s1373_s5, %s859_s13 }
  0xb9   : > { %309 = vrot.lane.b32.xlu0 %v1285_v7, %s1128_s10 }
  0xc0   : > { %387 = vrot.lane.b32.xlu2 %v1285_v7, %s1129_s11  ;;  %s274_s11 = scalar_lea.vmem [#allocation8], %s837_s6  ;;  %s1070_s6 = scalar_lea.hbm %s1373_s5, 16 }
  0xc8   : > { %617 = vrot.lane.b32.xlu2 %v1285_v7, %s1130_s14  ;;  %s737_s14 = sshll.u32 %s274_s11, 4  ;;  %s738_s14 = int_to_ptr.vmem [resolvable:$true] %s737_s14 }
  0xd0   : > { %615 = vrot.lane.b32.xlu2 %v1285_v7, %s1131_s27  ;;  %s739_s27 = sshll.u32 %s735_s8, 4  ;;  %s740_s27 = int_to_ptr.hbm [resolvable:$true] %s739_s27 }
  0xd8   : > { %514 = vrot.lane.b32.xlu2 %v1285_v7, %s1132_s28  ;;  %s1064_s28 = sshra.s32 %s740_s27, 4  ;;  %s1065_s28 = int_to_ptr.hbm [resolvable:$true] %s1064_s28 }
  0xd9   : > { %p1071_p12 = scmp.lt.s32.totalorder %s1065_s28, %s1373_s5 }
  0xe0   : > { %512 = vrot.lane.b32.xlu2 %v1285_v7, %s1133_s29  ;;  %s1066_s29 = scalar_lea.hbm %s1065_s28, 8 }
  0xe1   : > { %p1067_p1 = scmp.ne.s32.totalorder %s1065_s28, %s1066_s29  ;;  %p1072_p7 = scmp.lt.s32.totalorder %s1070_s6, %s1066_s29 }
  0xe3   : > { %p1068_p3 = pnand %p1067_p1, %p1236_p4  ;;  %p1073_p8 = por %p1072_p7, %p1071_p12 }
  0xe5   : > { %p1069_p5 = pneg %p1068_p3 }
  0xe7   : > { %p1074_p9 = pnand %p1073_p8, %p1069_p5 }
 0x112   : > { %v390_v9 = vpop.permute.xlu2 %389 }
 0x113   : > { %845 = vmatpush.xpose.msk.msra.mxu3 %vm311_vm1, %v390_v9 }
 0x117   : > { %507 = vmatpush.msrb.mxu3 %v386_v8 }
 0x11a   : > { %v388_v10 = vpop.permute.xlu2 %387 }
 0x11b   : > { %846 = vmatmul.msk.f32.vlgmr.msra.gmra.mxu3 %vm311_vm1, %v388_v10 }
 0x122   : > { %v618_v11 = vpop.permute.xlu2 %617 }
 0x123   : > { %854 = vmatpush.xpose.msk.msra.mxu3 %vm311_vm1, %v618_v11 }
 0x12a   : > { %v1298_v12 = vpop.permute.xlu2 %615  ;;  %v346_v13 = vpop.permute.xlu1 %345 }
 0x12b   : > { %v310_v14 = vpop.permute.xlu0 %309  ;;  %366 = vmatpush.msra.mxu2 %v346_v13 }
 0x12c   : > { %842 = vmatpush.xpose.msk.msra.mxu1 %vm311_vm1, %v310_v14  ;;  %v590_v14 = vld [vmem:[#allocation7 + $0x10] sm:$0xff] }
 0x12f   : > { %843 = vmatmul.msk.f32.vlgmr.msra.gmra.mxu1 %vm311_vm1, %v1285_v7 }
 0x130   : > { %484 = vmatpush.msrb.mxu1 %v465_v62 }
 0x132   : > { %v515_v15 = vpop.permute.xlu2 %514  ;;  %609 = vmatpush.msra.mxu1 %v590_v14 }
 0x133   : > { %850 = vmatpush.xpose.msk.msrb.mxu0 %vm311_vm1, %v515_v15 }
 0x13a   : > { %v513_v16 = vpop.permute.xlu2 %512 }
 0x13b   : > { %851 = vmatmul.msk.f32.vlgmr.msrb.gmra.mxu0 %vm311_vm1, %v513_v16 }
 0x19e   : > { %v412_v17 = vpop.f32.mrf.mxu3 }
 0x19f   : > { %v415_v18 = vsel %vm311_vm1, %v412_v17, -inf }
 0x1a0   : > { %416 = vmax.xlane.f32.xlu2 %v415_v18 }
 0x1ac   : > { %v333_v19 = vpop.f32.mrf.mxu1 }
 0x1ad   : > { %v336_v20 = vsel %vm311_vm1, %v333_v19, -inf }
 0x1ae   : > { %337 = vmax.xlane.f32.xlu0 %v336_v20 }
 0x1b8   : > { %v537_v21 = vpop.f32.mrf.mxu0 }
 0x1b9   : > { %v540_v22 = vsel %vm311_vm1, %v537_v21, -inf }
 0x1ba   : > { %541 = vmax.xlane.f32.xlu0 %v540_v22 }
 0x1ce   : > { %424 = vrot.lane.b32.xlu0 %v1285_v7, %s1134_s30 }
 0x1d6   : > { %652 = vrot.lane.b32.xlu0 %v1285_v7, %s1135_s16 }
 0x213   : > { %v417_v30 = vpop.xlane.xlu2 %416 }
 0x214   : > { %v418_v32 = vsub.f32 %v412_v17, %v417_v30 }
 0x216   : > { %v419_v33 = vmul.f32 1.442695, %v418_v32 }
 0x221   : > { %v338_v23 = vpop.xlane.xlu0 %337 }
 0x222   : > { %v339_v24 = vsub.f32 %v333_v19, %v338_v23 }
 0x224   : > { %v340_v25 = vmul.f32 1.442695, %v339_v24 }
 0x226   : > { %944 = vpow2.f32 %v340_v25 }
 0x22c   : > { %v945_v26 = vpop.eup %944 }
 0x22d   : > { %844 = vmatmul.msk.f32.vlgmr.msra.gmra.mxu2 %vm311_vm1, %v945_v26  ;;  %v342_v27 = vsel %vm311_vm1, %v945_v26, 0.0  ;;  %v542_v28 = vpop.xlane.xlu0 %541 }
 0x22e   : > { %343 = vadd.xlane.f32.xlu1 %v342_v27  ;;  %v543_v29 = vsub.f32 %v537_v21, %v542_v28 }
 0x230   : > { %v544_v31 = vmul.f32 1.442695, %v543_v29 }
 0x232   : > { %946 = vpow2.f32 %v544_v31 }
 0x233   : > { %948 = vpow2.f32 %v419_v33 }
 0x238   : > { %v947_v34 = vpop.eup %946 }
 0x239   : > { %v546_v35 = vsel %vm311_vm1, %v947_v34, 0.0  ;;  %v949_v37 = vpop.eup %948 }
 0x23a   : > { %547 = vadd.xlane.f32.xlu2 %v546_v35  ;;  %v421_v55 = vsel %vm311_vm1, %v949_v37, 0.0 }
 0x240   : > { %v425_v36 = vpop.permute.xlu0 %424 }
 0x241   : > { %445 = vmatpush.msrb.mxu2 %v425_v36 }
 0x242   : > { %847 = vmatmul.msk.f32.vlgmr.msrb.gmra.mxu2 %vm311_vm1, %v949_v37 }
 0x248   : > { %v653_v38 = vpop.permute.xlu0 %652 }
 0x249   : > { %673 = vmatpush.msra.mxu0 %v653_v38 }
 0x2a1   : > { %v344_v39 = vpop.xlane.xlu1 %343 }
 0x2a2   : > { %950 = vrcp.f32 %v344_v39  ;;  %v382_v43 = vand.u32 2147483648, %v344_v39  ;;  %v380_v45 = vand.u32 2147483647, %v344_v39  ;;  %vm376_vm3 = vweird.f32 %v344_v39 }
 0x2a4   : > { %v383_v47 = vor.u32 1.1754944e-38, %v382_v43  ;;  %vm381_vm5 = vcmp.eq.f32.partialorder %v380_v45, 8.507059e+37 }
 0x2a8   : > { %v951_v40 = vpop.eup %950 }
 0x2a9   : > { %v372_v41 = vmul.f32 %v951_v40, %v344_v39  ;;  %vm377_vm2 = vweird.f32 %v951_v40 }
 0x2aa   : > { %vm378_vm4 = vmor %vm376_vm3, %vm377_vm2 }
 0x2ab   : > { %v373_v42 = vsub.f32 1.0, %v372_v41 }
 0x2ad   : > { %v374_v44 = vmul.f32 %v951_v40, %v373_v42  ;;  %v548_v13 = vpop.xlane.xlu2 %547 }
 0x2ae   : > { %v586_v33 = vand.u32 2147483648, %v548_v13  ;;  %vm580_vm15 = vweird.f32 %v548_v13 }
 0x2af   : > { %v375_v46 = vadd.f32 %v951_v40, %v374_v44  ;;  %v943_v44 = vld [vmem:[%s1372_s4] ss:$0 sm:$0xff] }
 0x2b0   : > { %v368_v49 = vpop.f32.mrf.mxu2  ;;  %v587_v36 = vor.u32 1.1754944e-38, %v586_v33 }
 0x2b1   : > { %v379_v48 = vsel %vm378_vm4, %v951_v40, %v375_v46 }
 0x2b2   : > { %v384_v50 = vsel %vm381_vm5, %v383_v47, %v379_v48 }
 0x2b3   : > { %v385_v51 = vmul.f32 %v384_v50, %v368_v49 }
 0x2b5   : > { %849 = vmatmul.msk.f32.vlgmr.msrb.gmra.mxu3 %vm311_vm1, %v385_v51 }
 0x2bd   : > { %855 = vmatmul.msk.f32.vlgmr.msra.gmra.mxu3 %vm311_vm1, %v1298_v12  ;;  %v693_v12 = vld [vmem:[#allocation7 + $0x18] sm:$0xff] }
 0x2c5   : > { %v447_v9 = vpop.f32.mrf.mxu2 }
 0x338   : > { %v1317_v52 = vpop.f32.mrf.mxu3 }
 0x340   : > { %v640_v53 = vpop.f32.mrf.mxu3 }
 0x341   : > { %v643_v54 = vsel %vm311_vm1, %v640_v53, -inf }
 0x342   : > { %644 = vmax.xlane.f32.xlu1 %v643_v54 }
 0x35b   : > { %549 = vrot.lane.b32.xlu1 %v1285_v7, %s1136_s7 }
 0x385   : > { %422 = vadd.xlane.f32.xlu1 %v421_v55 }
 0x3b5   : > { %v645_v56 = vpop.xlane.xlu1 %644 }
 0x3b6   : > { %v646_v57 = vsub.f32 %v640_v53, %v645_v56 }
 0x3b8   : > { %v647_v58 = vmul.f32 1.442695, %v646_v57 }
 0x3ba   : > { %952 = vpow2.f32 %v647_v58 }
 0x3c0   : > { %v953_v59 = vpop.eup %952 }
 0x3c1   : > { %856 = vmatmul.msk.f32.vlgmr.msra.gmra.mxu0 %vm311_vm1, %v953_v59  ;;  %v649_v60 = vsel %vm311_vm1, %v953_v59, 0.0 }
 0x3c2   : > { %650 = vadd.xlane.f32.xlu0 %v649_v60 }
 0x3cd   : > { %v550_v61 = vpop.permute.xlu1 %549 }
 0x3ce   : > { %570 = vmatpush.msra.mxu2 %v550_v61 }
 0x3cf   : > { %852 = vmatmul.msk.f32.vlgmr.msra.gmra.mxu2 %vm311_vm1, %v947_v34  ;;  %v584_v34 = vand.u32 2147483647, %v548_v13 }
 0x3d0   : > { %712 = vmatpush.msrb.mxu2 %v693_v12 }
 0x3d1   : > { %vm585_vm3 = vcmp.eq.f32.partialorder %v584_v34, 8.507059e+37 }
 0x3f8   : > { %v423_v63 = vpop.xlane.xlu1 %422 }
 0x3f9   : > { %954 = vrcp.f32 %v423_v63  ;;  %v461_v3 = vand.u32 2147483648, %v423_v63  ;;  %v459_v5 = vand.u32 2147483647, %v423_v63  ;;  %vm455_vm7 = vweird.f32 %v423_v63 }
 0x3fa   : > { %956 = vrcp.f32 %v548_v13 }
 0x3fb   : > { %v462_v7 = vor.u32 1.1754944e-38, %v461_v3  ;;  %vm460_vm9 = vcmp.eq.f32.partialorder %v459_v5, 8.507059e+37 }
 0x3ff   : > { %v955_v0 = vpop.eup %954 }
 0x400   : > { %v451_v1 = vmul.f32 %v955_v0, %v423_v63  ;;  %vm456_vm6 = vweird.f32 %v955_v0  ;;  %v957_v16 = vpop.eup %956 }
 0x401   : > { %vm457_vm8 = vmor %vm455_vm7, %vm456_vm6  ;;  %v576_v19 = vmul.f32 %v957_v16, %v548_v13  ;;  %vm581_vm14 = vweird.f32 %v957_v16 }
 0x402   : > { %v452_v2 = vsub.f32 1.0, %v451_v1  ;;  %vm582_vm2 = vmor %vm580_vm15, %vm581_vm14 }
 0x403   : > { %v577_v24 = vsub.f32 1.0, %v576_v19 }
 0x404   : > { %v453_v4 = vmul.f32 %v955_v0, %v452_v2 }
 0x405   : > { %v578_v30 = vmul.f32 %v957_v16, %v577_v24 }
 0x406   : > { %v454_v6 = vadd.f32 %v955_v0, %v453_v4 }
 0x407   : > { %v579_v32 = vadd.f32 %v957_v16, %v578_v30 }
 0x408   : > { %v458_v8 = vsel %vm457_vm8, %v955_v0, %v454_v6 }
 0x409   : > { %v463_v10 = vsel %vm460_vm9, %v462_v7, %v458_v8  ;;  %v583_v35 = vsel %vm582_vm2, %v957_v16, %v579_v32 }
 0x40a   : > { %v464_v11 = vmul.f32 %v463_v10, %v447_v9  ;;  %v588_v38 = vsel %vm585_vm3, %v587_v36, %v583_v35 }
 0x40c   : > { %848 = vmatmul.msk.f32.vlgmr.msrb.gmra.mxu1 %vm311_vm1, %v464_v11 }
 0x435   : > { %v651_v15 = vpop.xlane.xlu0 %650 }
 0x436   : > { %958 = vrcp.f32 %v651_v15  ;;  %v689_v21 = vand.u32 2147483648, %v651_v15  ;;  %v687_v23 = vand.u32 2147483647, %v651_v15  ;;  %vm683_vm11 = vweird.f32 %v651_v15 }
 0x438   : > { %v690_v26 = vor.u32 1.1754944e-38, %v689_v21  ;;  %vm688_vm13 = vcmp.eq.f32.partialorder %v687_v23, 8.507059e+37 }
 0x43c   : > { %v959_v17 = vpop.eup %958 }
 0x43d   : > { %v679_v18 = vmul.f32 %v959_v17, %v651_v15  ;;  %vm684_vm10 = vweird.f32 %v959_v17 }
 0x43e   : > { %vm685_vm12 = vmor %vm683_vm11, %vm684_vm10  ;;  %v675_v28 = vpop.f32.mrf.mxu0 }
 0x43f   : > { %v680_v20 = vsub.f32 1.0, %v679_v18 }
 0x441   : > { %v681_v22 = vmul.f32 %v959_v17, %v680_v20 }
 0x443   : > { %v682_v25 = vadd.f32 %v959_v17, %v681_v22 }
 0x445   : > { %v686_v27 = vsel %vm685_vm12, %v959_v17, %v682_v25 }
 0x446   : > { %v691_v29 = vsel %vm688_vm13, %v690_v26, %v686_v27 }
 0x447   : > { %v692_v31 = vmul.f32 %v691_v29, %v675_v28 }
 0x449   : > { %857 = vmatmul.msk.f32.vlgmr.msrb.gmra.mxu2 %vm311_vm1, %v692_v31 }
 0x452   : > { %v572_v37 = vpop.f32.mrf.mxu2 }
 0x453   : > { %v589_v39 = vmul.f32 %v588_v38, %v572_v37 }
 0x455   : > { %853 = vmatmul.msk.f32.vlgmr.msra.gmra.mxu1 %vm311_vm1, %v589_v39 }
 0x489   : > { %v486_v40 = vpop.f32.mrf.mxu1 }
 0x48a   : > { %v510_v41 = vadd.f32 %v1317_v52, %v486_v40 }
 0x4cc   : > { %v714_v45 = vpop.f32.mrf.mxu2 }
 0x4d2   : > { %v611_v42 = vpop.f32.mrf.mxu1 }
 0x4d3   : > { %v614_v43 = vadd.f32 %v611_v42, %v510_v41 }
 0x4d5   : > { %v717_v46 = vadd.f32 %v714_v45, %v614_v43 }
 0x4d7   : > { %v722_v47 = vadd.f32 %v943_v44, %v717_v46 }
 0x4d9   : > { %723 = vst.msk [vmem:[%s274_s11] sm:$0xff] %vm284_vm0, %v722_v47 }
 0x4da   : > { %1077 = shalt.err (!%p1074_p9)
}
 0x4db   : > { %872 = dma.vmem_to_hbm [thread:$0]  (%p1236_p4), %s738_s14, 128, %s740_s27, %s725_s25  }
 0x4dc PF: > { %s751_s22 = sand.u32 1, %s1108_s18   ;;  %p1380_p10 = scmp.ge.s32.totalorder %s1120_s21, 2 }
 0x4dd   : > { %s752_s26 = scalar_lea.sflag [#allocation4], %s751_s22 }
 0x4de   : > { %p886_p13 = pnand %p1380_p10, %p1240_p6 }
 0x4e0   : > { %p887_p11 = pneg %p886_p13 }
 0x4e2   : > { %1103 = dma.done.wait (%p887_p11), %s752_s26, 128  }
 0x4e3   : > { %1105 = vsyncadd (%p887_p11), %s752_s26, 4294967168  ;;  %p19_p0 = scmp.ge.s32.totalorder %s1210_s12, 4   ;;  %s1381_s18 = smov %s1112_s19 }
 0x4e4   : > { %s1382_s19 = smov %s1116_s20  ;;  %s1383_s20 = smov %s1221_s15 }
 0x4e5   : > { %s1384_s21 = smov %s1210_s12  ;;  %21 = sbr.rel (!%p19_p0) target bundleno = 6 (0x6), region = 93 }
 0x4ea   :  { %758 = vsyncpa [#allocation3], 1 }
 0x4eb   :  { %760 = vsyncpa [#allocation3 + $0x1], 1 }
 0x4ec   :  { %761 = vsyncpa [#allocation6], 1 }
 0x4ed   :  { %762 = vsyncpa [#allocation4], 1 }
 0x4ee   :  { %764 = vsyncpa [#allocation4 + $0x1], 1 }

// kernel: tpu_custom_call.1
= control target key start
LH: loop header
LB: loop body
LE: loop exit
PB: predicated region body
PF: predicated region fallthrough
CT: control target
= control target key end

     0   :  { %10 = vsyncpa [#allocation3], 0  ;;  %s1368_s0 = inlined_call_operand.hbm [shape: f32[2,8,32], index: 0, kind: input, shape index: {}]   ;;  %s1369_s1 = inlined_call_operand.hbm [shape: f32[32,96], index: 1, kind: input, shape index: {}]   ;;  %s1370_s2 = inlined_call_operand.vmem [shape: f32[1,96], index: 2, kind: input, shape index: {}]   ;;  %s1371_s3 = inlined_call_operand.hbm [shape: f32[32,32], index: 3, kind: input, shape index: {}]   ;;  %s1372_s4 = inlined_call_operand.vmem [shape: f32[1,32], index: 4, kind: input, shape index: {}]   ;;  %s1373_s5 = inlined_call_operand.hbm [shape: f32[2,8,32], index: 5, kind: output, shape index: {}]  }
   0x1   :  { %12 = vsyncpa [#allocation3 + $0x1], 0 }
   0x2   :  { %13 = vsyncpa [#allocation6], 0 }
   0x3   :  { %14 = vsyncpa [#allocation4], 0 }
   0x4   :  { %16 = vsyncpa [#allocation4 + $0x1], 0  ;;  %s1167_s18 = smov 0   ;;  %s1169_s19 = smov 0  }
   0x5   :  { %s1171_s20 = smov 0   ;;  %s1173_s21 = smov 0  }
   0x6 LB: > { %s174_s24 = sshll.u32 %s1369_s1, 4  ;;  %s1191_s25 = sadd.s32 4294967295, %s1120_s21   ;;  %s1120_s21 = sphi %s1173_s21, %s1384_s21   ;;  %s1116_s20 = sphi %s1171_s20, %s1383_s20   ;;  %s1112_s19 = sphi %s1169_s19, %s1382_s19   ;;  %s1108_s18 = sphi %s1167_s18, %s1381_s18   ;;  %s175_s24 = int_to_ptr.hbm [resolvable:$true] %s174_s24 }
   0x7   : > { %p830_p0 = scmp.ge.s32.totalorder %s1120_s21, 1  ;;  %p43_p1 = scmp.eq.s32.totalorder %s1191_s25, 0 }
   0x8   : > { %p163_p2 = scmp.lt.s32.totalorder %s1120_s21, 3  ;;  %s1122_s27 = smov [#allocation5]  }
   0x9   : > { %s176_s28 = sshll.u32 %s1122_s27, 4  ;;  %s191_s6 = sshll.u32 %s1371_s3, 4  ;;  %s177_s28 = int_to_ptr.vmem [resolvable:$true] %s176_s28  ;;  %s192_s6 = int_to_ptr.hbm [resolvable:$true] %s191_s6 }
   0xa   : > { %p1196_p3 = pnand %p830_p0, %p163_p2  ;;  %s1123_s7 = smov [#allocation7]  }
   0xb   : > { %s193_s8 = sshll.u32 %s1123_s7, 4  ;;  %s1124_s9 = smov 128   ;;  %s194_s8 = int_to_ptr.vmem [resolvable:$true] %s193_s8 }
   0xc   : > { %p874_p4 = pneg %p1196_p3  ;;  %s1125_s10 = smov 8  }
   0xd   : > { %s829_s11 = sadd.s32 4294967294, %s1120_s21   ;;  %s1210_s12 = sadd.s32 1, %s1120_s21  }
   0xe   : > { %p875_p6 = pnand %p874_p4, %p43_p1  ;;  %s26_s13 = ssub.s32 %s1120_s21, %s1210_s12 }
   0xf   : > { %s29_s14 = sadd.s32 1, %s1116_s20  ;;  %p27_p7 = scmp.eq.s32.totalorder %s26_s13, 0 }
  0x10   : > { %877 = dma.hbm_to_vmem [thread:$0]  (!%p875_p6), %s175_s24, 512, %s177_s28, [#allocation6], %s1124_s9, %s1124_s9, %s1125_s10  }
  0x11   : > { %880 = dma.hbm_to_vmem [thread:$0]  (!%p875_p6), %s192_s6, 512, %s194_s8, [#allocation6], %s1124_s9, %s1124_s9, %s1125_s10  }
  0x12   : > { %p36_p8 = scmp.ne.s32.totalorder %s1116_s20, %s1112_s19  ;;  %p37_p9 = scmp.eq.s32.totalorder %s1120_s21, 0 }
  0x13   : > { %p42_p10 = scmp.ne.s32.totalorder %s1112_s19, %s1108_s18  ;;  %p150_p13 = scmp.eq.s32.totalorder %s1191_s25, 1 }
  0x14   : > { %s1221_s15 = scalar_select %p27_p7, %s1116_s20, %s29_s14  }
  0x15   : > { %p1223_p11 = por %p37_p9, %p36_p8  ;;  %p1229_p12 = por %p43_p1, %p42_p10 }
  0x16   : > { %p156_p0 = scmp.eq.s32.totalorder %s829_s11, 1  ;;  %p891_p2 = scmp.lt.s32.totalorder %s1120_s21, 2 }
  0x17   : > { %s210_s22 = sand.u32 1, %s1116_s20   ;;  %p1236_p4 = por %p150_p13, %p36_p8 }
  0x18   : > { %p1240_p6 = por %p156_p0, %p42_p10  ;;  %s834_s27 = sshll.u32 %s210_s22, 3 }
  0x19   : > { %s835_s28 = sshll.u32 %s1120_s21, 3  ;;  %s214_s7 = scalar_lea.vmem [#allocation2], %s834_s27 }
  0x1a   : > { %s218_s6 = scalar_lea.hbm %s1368_s0, %s835_s28  ;;  %s222_s8 = sshll.u32 %s214_s7, 4  ;;  %s223_s8 = int_to_ptr.vmem [resolvable:$true] %s222_s8 }
  0x1b   : > { %s220_s9 = sshll.u32 %s218_s6, 4  ;;  %p1250_p7 = pnand %p891_p2, %p1223_p11  ;;  %s221_s9 = int_to_ptr.hbm [resolvable:$true] %s220_s9 }
  0x1c   : > { %s211_s11 = scalar_lea.sflag [#allocation3], %s210_s22  ;;  %s1020_s13 = sshra.s32 %s221_s9, 4  ;;  %s1021_s13 = int_to_ptr.hbm [resolvable:$true] %s1020_s13 }
  0x1d   : > { %s1022_s14 = scalar_lea.hbm %s1021_s13, 8  ;;  %p1024_p9 = pneg %p1250_p7 }
  0x1e   : > { %p1023_p8 = scmp.ne.s32.totalorder %s1021_s13, %s1022_s14  ;;  %s1027_s29 = scalar_lea.hbm %s1368_s0, 16 }
  0x1f   : > { %p1028_p11 = scmp.lt.s32.totalorder %s1021_s13, %s1368_s0  ;;  %p1029_p0 = scmp.lt.s32.totalorder %s1027_s29, %s1022_s14 }
  0x20   : > { %p1025_p10 = pnand %p1024_p9, %p1023_p8 }
  0x21   : > { %p1030_p2 = por %p1029_p0, %p1028_p11 }
  0x22   : > { %p1026_p13 = pneg %p1025_p10 }
  0x24   : > { %p1031_p5 = pnand %p1030_p2, %p1026_p13 }
  0x26   : > { %1034 = shalt.err (!%p1031_p5)
}
  0x27   : > { %884 = dma.hbm_to_vmem [thread:$0]  (!%p1250_p7), %s221_s9, 128, %s223_s8, %s211_s11  }
  0x28   : > { %231 = sbr.rel (%p1196_p3) target bundleno = 1244 (0x4dc), region = 40  ;;  %s1267_s22 = sand.u32 (!%p1196_p3), 1, %s1112_s19  }
  0x29   : > { %s837_s6 = sshll.u32 (!%p1196_p3), %s1267_s22, 3  ;;  %s234_s7 = scalar_lea.sflag (!%p1196_p3), [#allocation3], %s1267_s22 }
  0x2a   : > { %s237_s13 = scalar_lea.vmem (!%p1196_p3), [#allocation2], %s837_s6 }
  0x2d   : > { %1095 = dma.done.wait (%p1229_p12), %s234_s7, 128  }
  0x2e   : > { %1097 = vsyncadd (%p1229_p12), %s234_s7, 4294967168 }
  0x2f   : > { %1099 = dma.done.wait (%p43_p1), [#allocation6], 1024  }
  0x30   : > { %1101 = vsyncadd (%p43_p1), [#allocation6], 4294966272  ;;  %v279_v0 = vld [vmem:[#allocation5 + $0x18] sm:$0xff]  ;;  %v278_v1 = vld [vmem:[#allocation5 + $0x10] sm:$0xff]  ;;  %vm284_vm0 = vcmask 261120   ;;  %s1126_s8 = smov 88  }
  0x31   : > { %300 = vmatpush.msra.mxu0 %v279_v0  ;;  %v277_v2 = vld [vmem:[#allocation5 + $0x8] sm:$0xff]  ;;  %v276_v3 = vld [vmem:[#allocation5] sm:$0xff]  ;;  %v275_v4 = vld [vmem:[%s237_s13] sm:$0xff]  ;;  %s1127_s9 = smov 64   ;;  %s1128_s10 = smov 96   ;;  %vm311_vm1 = vcmask 64512  }
  0x32   : > { %v942_v5 = vld [vmem:[%s1370_s2] ss:$0 sm:$0xff]  ;;  %s1129_s11 = smov 120   ;;  %s1130_s14 = smov 72   ;;  %v386_v8 = vld [vmem:[#allocation7] sm:$0xff]  ;;  %v465_v62 = vld [vmem:[#allocation7 + $0x8] sm:$0xff] }
  0x33   : > { %301 = vmatpush.msra.mxu0 %v278_v1  ;;  %s1131_s27 = smov 104   ;;  %s1132_s28 = smov 80  }
  0x34   : > { %s1133_s29 = smov 112   ;;  %s1134_s30 = smov 56  }
  0x35   : > { %302 = vmatpush.msra.mxu0 %v277_v2  ;;  %s1135_s16 = smov 40   ;;  %s1136_s7 = smov 48  }
  0x36   : > { %s859_s13 = sshll.u32 %s1191_s25, 3  ;;  %s725_s25 = scalar_lea.sflag [#allocation4], %s1267_s22 }
  0x37   : > { %303 = vmatpush.msra.mxu0 %v276_v3 }
  0x38   : > { %841 = vmatmul.msk.f32.vlgmr.msra.gmra.mxu0 %vm284_vm0, %v275_v4 }
  0xb5   : > { %v305_v6 = vpop.f32.mrf.mxu0 }
  0xb6   : > { %v1285_v7 = vadd.f32 %v942_v5, %v305_v6 }
  0xb8   : > { %389 = vrot.lane.b32.xlu2 %v1285_v7, %s1126_s8  ;;  %345 = vrot.lane.b32.xlu1 %v1285_v7, %s1127_s9  ;;  %s735_s8 = scalar_lea.hbm %s1373_s5, %s859_s13 }
  0xb9   : > { %309 = vrot.lane.b32.xlu0 %v1285_v7, %s1128_s10 }
  0xc0   : > { %387 = vrot.lane.b32.xlu2 %v1285_v7, %s1129_s11  ;;  %s274_s11 = scalar_lea.vmem [#allocation8], %s837_s6  ;;  %s1070_s6 = scalar_lea.hbm %s1373_s5, 16 }
  0xc8   : > { %617 = vrot.lane.b32.xlu2 %v1285_v7, %s1130_s14  ;;  %s737_s14 = sshll.u32 %s274_s11, 4  ;;  %s738_s14 = int_to_ptr.vmem [resolvable:$true] %s737_s14 }
  0xd0   : > { %615 = vrot.lane.b32.xlu2 %v1285_v7, %s1131_s27  ;;  %s739_s27 = sshll.u32 %s735_s8, 4  ;;  %s740_s27 = int_to_ptr.hbm [resolvable:$true] %s739_s27 }
  0xd8   : > { %514 = vrot.lane.b32.xlu2 %v1285_v7, %s1132_s28  ;;  %s1064_s28 = sshra.s32 %s740_s27, 4  ;;  %s1065_s28 = int_to_ptr.hbm [resolvable:$true] %s1064_s28 }
  0xd9   : > { %p1071_p12 = scmp.lt.s32.totalorder %s1065_s28, %s1373_s5 }
  0xe0   : > { %512 = vrot.lane.b32.xlu2 %v1285_v7, %s1133_s29  ;;  %s1066_s29 = scalar_lea.hbm %s1065_s28, 8 }
  0xe1   : > { %p1067_p1 = scmp.ne.s32.totalorder %s1065_s28, %s1066_s29  ;;  %p1072_p7 = scmp.lt.s32.totalorder %s1070_s6, %s1066_s29 }
  0xe3   : > { %p1068_p3 = pnand %p1067_p1, %p1236_p4  ;;  %p1073_p8 = por %p1072_p7, %p1071_p12 }
  0xe5   : > { %p1069_p5 = pneg %p1068_p3 }
  0xe7   : > { %p1074_p9 = pnand %p1073_p8, %p1069_p5 }
 0x112   : > { %v390_v9 = vpop.permute.xlu2 %389 }
 0x113   : > { %845 = vmatpush.xpose.msk.msra.mxu3 %vm311_vm1, %v390_v9 }
 0x117   : > { %507 = vmatpush.msrb.mxu3 %v386_v8 }
 0x11a   : > { %v388_v10 = vpop.permute.xlu2 %387 }
 0x11b   : > { %846 = vmatmul.msk.f32.vlgmr.msra.gmra.mxu3 %vm311_vm1, %v388_v10 }
 0x122   : > { %v618_v11 = vpop.permute.xlu2 %617 }
 0x123   : > { %854 = vmatpush.xpose.msk.msra.mxu3 %vm311_vm1, %v618_v11 }
 0x12a   : > { %v1298_v12 = vpop.permute.xlu2 %615  ;;  %v346_v13 = vpop.permute.xlu1 %345 }
 0x12b   : > { %v310_v14 = vpop.permute.xlu0 %309  ;;  %366 = vmatpush.msra.mxu2 %v346_v13 }
 0x12c   : > { %842 = vmatpush.xpose.msk.msra.mxu1 %vm311_vm1, %v310_v14  ;;  %v590_v14 = vld [vmem:[#allocation7 + $0x10] sm:$0xff] }
 0x12f   : > { %843 = vmatmul.msk.f32.vlgmr.msra.gmra.mxu1 %vm311_vm1, %v1285_v7 }
 0x130   : > { %484 = vmatpush.msrb.mxu1 %v465_v62 }
 0x132   : > { %v515_v15 = vpop.permute.xlu2 %514  ;;  %609 = vmatpush.msra.mxu1 %v590_v14 }
 0x133   : > { %850 = vmatpush.xpose.msk.msrb.mxu0 %vm311_vm1, %v515_v15 }
 0x13a   : > { %v513_v16 = vpop.permute.xlu2 %512 }
 0x13b   : > { %851 = vmatmul.msk.f32.vlgmr.msrb.gmra.mxu0 %vm311_vm1, %v513_v16 }
 0x19e   : > { %v412_v17 = vpop.f32.mrf.mxu3 }
 0x19f   : > { %v415_v18 = vsel %vm311_vm1, %v412_v17, -inf }
 0x1a0   : > { %416 = vmax.xlane.f32.xlu2 %v415_v18 }
 0x1ac   : > { %v333_v19 = vpop.f32.mrf.mxu1 }
 0x1ad   : > { %v336_v20 = vsel %vm311_vm1, %v333_v19, -inf }
 0x1ae   : > { %337 = vmax.xlane.f32.xlu0 %v336_v20 }
 0x1b8   : > { %v537_v21 = vpop.f32.mrf.mxu0 }
 0x1b9   : > { %v540_v22 = vsel %vm311_vm1, %v537_v21, -inf }
 0x1ba   : > { %541 = vmax.xlane.f32.xlu0 %v540_v22 }
 0x1ce   : > { %424 = vrot.lane.b32.xlu0 %v1285_v7, %s1134_s30 }
 0x1d6   : > { %652 = vrot.lane.b32.xlu0 %v1285_v7, %s1135_s16 }
 0x213   : > { %v417_v30 = vpop.xlane.xlu2 %416 }
 0x214   : > { %v418_v32 = vsub.f32 %v412_v17, %v417_v30 }
 0x216   : > { %v419_v33 = vmul.f32 1.442695, %v418_v32 }
 0x221   : > { %v338_v23 = vpop.xlane.xlu0 %337 }
 0x222   : > { %v339_v24 = vsub.f32 %v333_v19, %v338_v23 }
 0x224   : > { %v340_v25 = vmul.f32 1.442695, %v339_v24 }
 0x226   : > { %944 = vpow2.f32 %v340_v25 }
 0x22c   : > { %v945_v26 = vpop.eup %944 }
 0x22d   : > { %844 = vmatmul.msk.f32.vlgmr.msra.gmra.mxu2 %vm311_vm1, %v945_v26  ;;  %v342_v27 = vsel %vm311_vm1, %v945_v26, 0.0  ;;  %v542_v28 = vpop.xlane.xlu0 %541 }
 0x22e   : > { %343 = vadd.xlane.f32.xlu1 %v342_v27  ;;  %v543_v29 = vsub.f32 %v537_v21, %v542_v28 }
 0x230   : > { %v544_v31 = vmul.f32 1.442695, %v543_v29 }
 0x232   : > { %946 = vpow2.f32 %v544_v31 }
 0x233   : > { %948 = vpow2.f32 %v419_v33 }
 0x238   : > { %v947_v34 = vpop.eup %946 }
 0x239   : > { %v546_v35 = vsel %vm311_vm1, %v947_v34, 0.0  ;;  %v949_v37 = vpop.eup %948 }
 0x23a   : > { %547 = vadd.xlane.f32.xlu2 %v546_v35  ;;  %v421_v55 = vsel %vm311_vm1, %v949_v37, 0.0 }
 0x240   : > { %v425_v36 = vpop.permute.xlu0 %424 }
 0x241   : > { %445 = vmatpush.msrb.mxu2 %v425_v36 }
 0x242   : > { %847 = vmatmul.msk.f32.vlgmr.msrb.gmra.mxu2 %vm311_vm1, %v949_v37 }
 0x248   : > { %v653_v38 = vpop.permute.xlu0 %652 }
 0x249   : > { %673 = vmatpush.msra.mxu0 %v653_v38 }
 0x2a1   : > { %v344_v39 = vpop.xlane.xlu1 %343 }
 0x2a2   : > { %950 = vrcp.f32 %v344_v39  ;;  %v382_v43 = vand.u32 2147483648, %v344_v39  ;;  %v380_v45 = vand.u32 2147483647, %v344_v39  ;;  %vm376_vm3 = vweird.f32 %v344_v39 }
 0x2a4   : > { %v383_v47 = vor.u32 1.1754944e-38, %v382_v43  ;;  %vm381_vm5 = vcmp.eq.f32.partialorder %v380_v45, 8.507059e+37 }
 0x2a8   : > { %v951_v40 = vpop.eup %950 }
 0x2a9   : > { %v372_v41 = vmul.f32 %v951_v40, %v344_v39  ;;  %vm377_vm2 = vweird.f32 %v951_v40 }
 0x2aa   : > { %vm378_vm4 = vmor %vm376_vm3, %vm377_vm2 }
 0x2ab   : > { %v373_v42 = vsub.f32 1.0, %v372_v41 }
 0x2ad   : > { %v374_v44 = vmul.f32 %v951_v40, %v373_v42  ;;  %v548_v13 = vpop.xlane.xlu2 %547 }
 0x2ae   : > { %v586_v33 = vand.u32 2147483648, %v548_v13  ;;  %vm580_vm15 = vweird.f32 %v548_v13 }
 0x2af   : > { %v375_v46 = vadd.f32 %v951_v40, %v374_v44  ;;  %v943_v44 = vld [vmem:[%s1372_s4] ss:$0 sm:$0xff] }
 0x2b0   : > { %v368_v49 = vpop.f32.mrf.mxu2  ;;  %v587_v36 = vor.u32 1.1754944e-38, %v586_v33 }
 0x2b1   : > { %v379_v48 = vsel %vm378_vm4, %v951_v40, %v375_v46 }
 0x2b2   : > { %v384_v50 = vsel %vm381_vm5, %v383_v47, %v379_v48 }
 0x2b3   : > { %v385_v51 = vmul.f32 %v384_v50, %v368_v49 }
 0x2b5   : > { %849 = vmatmul.msk.f32.vlgmr.msrb.gmra.mxu3 %vm311_vm1, %v385_v51 }
 0x2bd   : > { %855 = vmatmul.msk.f32.vlgmr.msra.gmra.mxu3 %vm311_vm1, %v1298_v12  ;;  %v693_v12 = vld [vmem:[#allocation7 + $0x18] sm:$0xff] }
 0x2c5   : > { %v447_v9 = vpop.f32.mrf.mxu2 }
 0x338   : > { %v1317_v52 = vpop.f32.mrf.mxu3 }
 0x340   : > { %v640_v53 = vpop.f32.mrf.mxu3 }
 0x341   : > { %v643_v54 = vsel %vm311_vm1, %v640_v53, -inf }
 0x342   : > { %644 = vmax.xlane.f32.xlu1 %v643_v54 }
 0x35b   : > { %549 = vrot.lane.b32.xlu1 %v1285_v7, %s1136_s7 }
 0x385   : > { %422 = vadd.xlane.f32.xlu1 %v421_v55 }
 0x3b5   : > { %v645_v56 = vpop.xlane.xlu1 %644 }
 0x3b6   : > { %v646_v57 = vsub.f32 %v640_v53, %v645_v56 }
 0x3b8   : > { %v647_v58 = vmul.f32 1.442695, %v646_v57 }
 0x3ba   : > { %952 = vpow2.f32 %v647_v58 }
 0x3c0   : > { %v953_v59 = vpop.eup %952 }
 0x3c1   : > { %856 = vmatmul.msk.f32.vlgmr.msra.gmra.mxu0 %vm311_vm1, %v953_v59  ;;  %v649_v60 = vsel %vm311_vm1, %v953_v59, 0.0 }
 0x3c2   : > { %650 = vadd.xlane.f32.xlu0 %v649_v60 }
 0x3cd   : > { %v550_v61 = vpop.permute.xlu1 %549 }
 0x3ce   : > { %570 = vmatpush.msra.mxu2 %v550_v61 }
 0x3cf   : > { %852 = vmatmul.msk.f32.vlgmr.msra.gmra.mxu2 %vm311_vm1, %v947_v34  ;;  %v584_v34 = vand.u32 2147483647, %v548_v13 }
 0x3d0   : > { %712 = vmatpush.msrb.mxu2 %v693_v12 }
 0x3d1   : > { %vm585_vm3 = vcmp.eq.f32.partialorder %v584_v34, 8.507059e+37 }
 0x3f8   : > { %v423_v63 = vpop.xlane.xlu1 %422 }
 0x3f9   : > { %954 = vrcp.f32 %v423_v63  ;;  %v461_v3 = vand.u32 2147483648, %v423_v63  ;;  %v459_v5 = vand.u32 2147483647, %v423_v63  ;;  %vm455_vm7 = vweird.f32 %v423_v63 }
 0x3fa   : > { %956 = vrcp.f32 %v548_v13 }
 0x3fb   : > { %v462_v7 = vor.u32 1.1754944e-38, %v461_v3  ;;  %vm460_vm9 = vcmp.eq.f32.partialorder %v459_v5, 8.507059e+37 }
 0x3ff   : > { %v955_v0 = vpop.eup %954 }
 0x400   : > { %v451_v1 = vmul.f32 %v955_v0, %v423_v63  ;;  %vm456_vm6 = vweird.f32 %v955_v0  ;;  %v957_v16 = vpop.eup %956 }
 0x401   : > { %vm457_vm8 = vmor %vm455_vm7, %vm456_vm6  ;;  %v576_v19 = vmul.f32 %v957_v16, %v548_v13  ;;  %vm581_vm14 = vweird.f32 %v957_v16 }
 0x402   : > { %v452_v2 = vsub.f32 1.0, %v451_v1  ;;  %vm582_vm2 = vmor %vm580_vm15, %vm581_vm14 }
 0x403   : > { %v577_v24 = vsub.f32 1.0, %v576_v19 }
 0x404   : > { %v453_v4 = vmul.f32 %v955_v0, %v452_v2 }
 0x405   : > { %v578_v30 = vmul.f32 %v957_v16, %v577_v24 }
 0x406   : > { %v454_v6 = vadd.f32 %v955_v0, %v453_v4 }
 0x407   : > { %v579_v32 = vadd.f32 %v957_v16, %v578_v30 }
 0x408   : > { %v458_v8 = vsel %vm457_vm8, %v955_v0, %v454_v6 }
 0x409   : > { %v463_v10 = vsel %vm460_vm9, %v462_v7, %v458_v8  ;;  %v583_v35 = vsel %vm582_vm2, %v957_v16, %v579_v32 }
 0x40a   : > { %v464_v11 = vmul.f32 %v463_v10, %v447_v9  ;;  %v588_v38 = vsel %vm585_vm3, %v587_v36, %v583_v35 }
 0x40c   : > { %848 = vmatmul.msk.f32.vlgmr.msrb.gmra.mxu1 %vm311_vm1, %v464_v11 }
 0x435   : > { %v651_v15 = vpop.xlane.xlu0 %650 }
 0x436   : > { %958 = vrcp.f32 %v651_v15  ;;  %v689_v21 = vand.u32 2147483648, %v651_v15  ;;  %v687_v23 = vand.u32 2147483647, %v651_v15  ;;  %vm683_vm11 = vweird.f32 %v651_v15 }
 0x438   : > { %v690_v26 = vor.u32 1.1754944e-38, %v689_v21  ;;  %vm688_vm13 = vcmp.eq.f32.partialorder %v687_v23, 8.507059e+37 }
 0x43c   : > { %v959_v17 = vpop.eup %958 }
 0x43d   : > { %v679_v18 = vmul.f32 %v959_v17, %v651_v15  ;;  %vm684_vm10 = vweird.f32 %v959_v17 }
 0x43e   : > { %vm685_vm12 = vmor %vm683_vm11, %vm684_vm10  ;;  %v675_v28 = vpop.f32.mrf.mxu0 }
 0x43f   : > { %v680_v20 = vsub.f32 1.0, %v679_v18 }
 0x441   : > { %v681_v22 = vmul.f32 %v959_v17, %v680_v20 }
 0x443   : > { %v682_v25 = vadd.f32 %v959_v17, %v681_v22 }
 0x445   : > { %v686_v27 = vsel %vm685_vm12, %v959_v17, %v682_v25 }
 0x446   : > { %v691_v29 = vsel %vm688_vm13, %v690_v26, %v686_v27 }
 0x447   : > { %v692_v31 = vmul.f32 %v691_v29, %v675_v28 }
 0x449   : > { %857 = vmatmul.msk.f32.vlgmr.msrb.gmra.mxu2 %vm311_vm1, %v692_v31 }
 0x452   : > { %v572_v37 = vpop.f32.mrf.mxu2 }
 0x453   : > { %v589_v39 = vmul.f32 %v588_v38, %v572_v37 }
 0x455   : > { %853 = vmatmul.msk.f32.vlgmr.msra.gmra.mxu1 %vm311_vm1, %v589_v39 }
 0x489   : > { %v486_v40 = vpop.f32.mrf.mxu1 }
 0x48a   : > { %v510_v41 = vadd.f32 %v1317_v52, %v486_v40 }
 0x4cc   : > { %v714_v45 = vpop.f32.mrf.mxu2 }
 0x4d2   : > { %v611_v42 = vpop.f32.mrf.mxu1 }
 0x4d3   : > { %v614_v43 = vadd.f32 %v611_v42, %v510_v41 }
 0x4d5   : > { %v717_v46 = vadd.f32 %v714_v45, %v614_v43 }
 0x4d7   : > { %v722_v47 = vadd.f32 %v943_v44, %v717_v46 }
 0x4d9   : > { %723 = vst.msk [vmem:[%s274_s11] sm:$0xff] %vm284_vm0, %v722_v47 }
 0x4da   : > { %1077 = shalt.err (!%p1074_p9)
}
 0x4db   : > { %872 = dma.vmem_to_hbm [thread:$0]  (%p1236_p4), %s738_s14, 128, %s740_s27, %s725_s25  }
 0x4dc PF: > { %s751_s22 = sand.u32 1, %s1108_s18   ;;  %p1380_p10 = scmp.ge.s32.totalorder %s1120_s21, 2 }
 0x4dd   : > { %s752_s26 = scalar_lea.sflag [#allocation4], %s751_s22 }
 0x4de   : > { %p886_p13 = pnand %p1380_p10, %p1240_p6 }
 0x4e0   : > { %p887_p11 = pneg %p886_p13 }
 0x4e2   : > { %1103 = dma.done.wait (%p887_p11), %s752_s26, 128  }
 0x4e3   : > { %1105 = vsyncadd (%p887_p11), %s752_s26, 4294967168  ;;  %p19_p0 = scmp.ge.s32.totalorder %s1210_s12, 4   ;;  %s1381_s18 = smov %s1112_s19 }
 0x4e4   : > { %s1382_s19 = smov %s1116_s20  ;;  %s1383_s20 = smov %s1221_s15 }
 0x4e5   : > { %s1384_s21 = smov %s1210_s12  ;;  %21 = sbr.rel (!%p19_p0) target bundleno = 6 (0x6), region = 93 }
 0x4ea   :  { %758 = vsyncpa [#allocation3], 1 }
 0x4eb   :  { %760 = vsyncpa [#allocation3 + $0x1], 1 }
 0x4ec   :  { %761 = vsyncpa [#allocation6], 1 }
 0x4ed   :  { %762 = vsyncpa [#allocation4], 1 }
 0x4ee   :  { %764 = vsyncpa [#allocation4 + $0x1], 1 }

</bundles_post_ra>
